<compile_context>
chip_gen: v7x
topology: tpu7x:2x2x1
jax: 0.10.0
libtpu: 0.0.40
codegen_flags: <defaults>
</compile_context>

<pallas_src>
import functools

import jax
import jax.numpy as jnp
from jax.experimental import pallas as pl
from jax.experimental.pallas import tpu as pltpu

NUM_JOINTS = 15          # SelfPose3d joint count (forward reshapes to (-1, 15, 5))
MAX_PEOPLE = 3           # candidate slots per image
C_MID = 32               # backbone hidden channels

N_3D = MAX_PEOPLE * NUM_JOINTS * 5      # 225
N_2D = MAX_PEOPLE * NUM_JOINTS * 2      # 90
N_GC = MAX_PEOPLE * 5                   # 15
N_HEADS = N_3D + N_2D + N_GC            # 330

_VMEM_LIMIT = 32 * 1024 * 1024


def _round_up(x, m):
    return ((x + m - 1) // m) * m


# ----------------------- fused dense-head matmul kernel --------------------- #

def _matmul_bias_kernel(x_ref, w_ref, b_ref, o_ref, *, relu):
    """Grid (M tiles, K tiles).  Accumulates directly into the f32 output
    block (same block for every k -> VMEM resident).  Bias is folded into the
    k == 0 init; optional ReLU at the last k."""
    k = pl.program_id(1)

    @pl.when(k == 0)
    def _():
        o_ref[...] = jnp.broadcast_to(b_ref[...], o_ref.shape)

    o_ref[...] += jnp.dot(x_ref[...].astype(jnp.bfloat16), w_ref[...],
                          preferred_element_type=jnp.float32)

    if relu:
        @pl.when(k == pl.num_programs(1) - 1)
        def _():
            o_ref[...] = jnp.maximum(o_ref[...], 0.0)


def pallas_matmul_bias(x, w, b, *, relu=False, tm=None, tk=None):
    """y = relu?(x @ w + b).

    x: [M, K]  (f32 or bf16; cast to bf16 in-kernel)
    w: [K, N]  bf16, pre-padded, N % 128 == 0
    b: [1, N]  f32
    M may be tiny (< 8): full-M blocks are used, so no M padding is needed.
    """
    M, K = x.shape
    K2, N = w.shape
    assert K == K2 and b.shape == (1, N)
    tm = M if tm is None else tm
    if tk is None or K % tk != 0:
        tk = K
    assert M % tm == 0 and K % tk == 0

    return pl.pallas_call(
        functools.partial(_matmul_bias_kernel, relu=relu),
        out_shape=jax.ShapeDtypeStruct((M, N), jnp.float32),
        grid_spec=pltpu.PrefetchScalarGridSpec(
            num_scalar_prefetch=0,
            grid=(M // tm, K // tk),
            in_specs=[
                pl.BlockSpec((tm, tk), lambda i, k: (i, k)),
                pl.BlockSpec((tk, N), lambda i, k: (k, 0)),
                pl.BlockSpec((1, N), lambda i, k: (0, 0)),
            ],
            out_specs=pl.BlockSpec((tm, N), lambda i, k: (i, 0)),
        ),
        compiler_params=pltpu.CompilerParams(
            dimension_semantics=("parallel", "arbitrary"),
            vmem_limit_bytes=_VMEM_LIMIT),
    )(x, w, b)


# -------------------------- fused backbone kernel --------------------------- #

def _backbone_kernel(xcol_ref, w1_ref, b1_ref, w2_ref, b2_ref, o_ref):
    """Several images per grid step.

    xcol_ref: [NB, H*W, 9*Cp] f32 im2col patch (9 taps concatenated on lanes)
    w1_ref  : [9*Cp, 128]     bf16 packed 3x3-conv weights (single matmul)
    b1_ref  : [1, 128]        f32
    w2_ref  : [128, 128]      bf16 1x1-conv weights (C_MID x NUM_JOINTS, padded)
    b2_ref  : [1, 128]        f32
    o_ref   : [NB, H*W, J]    f32 heatmaps, already sliced to the J real joints
    """
    nb, P, K1 = xcol_ref.shape
    J = o_ref.shape[-1]

    # Single lane-dense im2col matmul: one MXU push group instead of nine K=8
    # pushes + nine reshapes + nine f32 vector adds.  bf16 cast happens once.
    patch = xcol_ref[...].astype(jnp.bfloat16).reshape(nb * P, K1)
    acc = jnp.dot(patch, w1_ref[...], preferred_element_type=jnp.float32)

    # bias + ReLU, then the 1x1 conv fused in-kernel: the hidden activation
    # never touches HBM.
    h = jnp.maximum(acc + b1_ref[...], 0.0).astype(jnp.bfloat16)
    hm = jnp.dot(h, w2_ref[...], preferred_element_type=jnp.float32) + b2_ref[...]

    # Only the first J of 128 lanes are real joints; write just those.
    o_ref[...] = hm[:, :J].astype(o_ref.dtype).reshape(nb, P, J)


def backbone_forward(params, x_nchw, *, images_per_step=2):
    """3x3 conv + ReLU + 1x1 conv -> per-joint heatmaps, flat (N, H*W, J) f32.

    x_nchw carries both image sets concatenated along the batch axis so the
    conv weights are DMA'd once and the pipeline is warmed once.
    """
    N, C, H, W = x_nchw.shape
    Cp = params["w_conv1"].shape[0] // 9
    nb = images_per_step if N % images_per_step == 0 else 1

    # NHWC, SAME halo of 1, channel pad, then im2col (9 shifted windows
    # concatenated on channels).  Under jit this is one small fused op group
    # on tiny images; the resulting patch is lane-dense for a single matmul.
    x_nhwc = jnp.transpose(x_nchw, (0, 2, 3, 1))
    xp = jnp.pad(x_nhwc, ((0, 0), (1, 1), (1, 1), (0, Cp - C)))
    cols = [xp[:, ki:ki + H, kj:kj + W, :]
            for ki in range(3) for kj in range(3)]
    xcol = jnp.concatenate(cols, axis=-1).reshape(N, H * W, 9 * Cp)

    return pl.pallas_call(
        _backbone_kernel,
        out_shape=jax.ShapeDtypeStruct((N, H * W, NUM_JOINTS), jnp.float32),
        grid_spec=pltpu.PrefetchScalarGridSpec(
            num_scalar_prefetch=0,
            grid=(N // nb,),
            in_specs=[
                pl.BlockSpec((nb, H * W, 9 * Cp), lambda b: (b, 0, 0)),
                pl.BlockSpec((9 * Cp, 128), lambda b: (0, 0)),
                pl.BlockSpec((1, 128), lambda b: (0, 0)),
                pl.BlockSpec((128, 128), lambda b: (0, 0)),
                pl.BlockSpec((1, 128), lambda b: (0, 0)),
            ],
            out_specs=pl.BlockSpec((nb, H * W, NUM_JOINTS),
                                   lambda b: (b, 0, 0)),
        ),
        compiler_params=pltpu.CompilerParams(
            dimension_semantics=("parallel",),
            vmem_limit_bytes=_VMEM_LIMIT),
    )(xcol, params["w_conv1"], params["b_conv1"],
      params["w_conv2"], params["b_conv2"])


# ------------------------- synthetic PoseNet pieces ------------------------ #

@jax.jit
def posenet_forward(params, raw_images, views1):
    """Synthetic stand-in for PoseNet: returns the 5-tuple PoseModel expects.
    Static-shape graph -> jitted; only dynamic-shape filtering stays eager."""
    B = raw_images.shape[0]
    H, W = raw_images.shape[2], raw_images.shape[3]

    # Single fused backbone pass over both image sets.
    both = jnp.concatenate([raw_images, views1], axis=0)        # [2B, C, H, W]
    hm_flat = backbone_forward(params, both)                    # [2B, H*W, J]

    # Returned heatmaps in NCHW f32 (PyTorch parity); off the heads hot path.
    hm_nchw = jnp.transpose(hm_flat.reshape(2 * B, H, W, NUM_JOINTS),
                            (0, 3, 1, 2))
    all_heatmaps = [hm_nchw[:B], hm_nchw[B:]]

    # Head features are the backbone output rows as-is: K order is (H, W, J),
    # matching w_heads' row packing -> no transpose / pad anywhere.
    feat = hm_flat[:B].reshape(B, H * W * NUM_JOINTS)           # [B, 3840]

    # All three dense heads fused into one matmul (weights concatenated on N).
    heads = pallas_matmul_bias(feat, params["w_heads"], params["b_heads"],
                               relu=False, tk=1920)             # [B, 384]

    pred_3d = heads[:, :N_3D].reshape(B, MAX_PEOPLE, NUM_JOINTS, 5)
    pred_2d = heads[:, N_3D:N_3D + N_2D].reshape(B, MAX_PEOPLE, NUM_JOINTS, 2)
    grid_centers = heads[:, N_3D + N_2D:N_3D + N_2D + N_GC].reshape(
        B, MAX_PEOPLE, 5)

    # Validity flag lives in channel 3 (0 == valid), deterministic per person.
    flag = (jnp.arange(MAX_PEOPLE) % 2).astype(jnp.float32)
    pred_3d = pred_3d.at[..., 3].set(flag[None, :, None])
    grid_centers = grid_centers.at[..., 3].set(flag[None, :])

    # TODO(synk): real PoseNet crops per-person face patches; passthrough here.
    face_images = raw_images
    return pred_3d, pred_2d, all_heatmaps, grid_centers, face_images


def pose_model_forward(params, raw_images, views1, meta1):
    """Exact PoseModel.forward post-processing semantics (eager: dynamic shapes)."""
    del meta1  # unused in the synthetic network
    results = posenet_forward(params, raw_images, views1)
    pred_3d, pred_2d, all_heatmaps, grid_centers, face_images = results

    # TODO(synk): boolean-mask filtering yields dynamic shapes -> done eagerly
    # on concrete arrays, not inside a Pallas kernel / jit.
    pred_3d = pred_3d[pred_3d[..., 3] == 0]                 # [K, 5]
    grid_centers = grid_centers[grid_centers[..., 3] == 0]  # [K2, 5]

    if pred_3d.shape[0] == 0:
        pred_3d = None
    else:
        p3 = jnp.squeeze(pred_3d, axis=0) if pred_3d.shape[0] == 1 else pred_3d
        pred_3d = p3.reshape(-1, NUM_JOINTS, 5)
        p2 = jnp.squeeze(pred_2d, axis=0) if pred_2d.shape[0] == 1 else pred_2d
        pred_2d = p2.reshape(-1, NUM_JOINTS, 2)

    if grid_centers.shape[0] == 0:
        grid_centers = None
    else:
        gc = (jnp.squeeze(grid_centers, axis=0)
              if grid_centers.shape[0] == 1 else grid_centers)
        grid_centers = gc.reshape(-1, 5)

    return pred_3d, pred_2d, all_heatmaps, grid_centers, face_images


# ------------------------------ parameter init ----------------------------- #

def init_params(key, c_in, h, w):
    """Weights are pre-packed / pre-padded to TPU-friendly shapes and pre-cast
    to bf16 once here, so no padding / cast / transpose kernels run on the
    per-forward HBM path."""
    ks = jax.random.split(key, 8)
    cp = _round_up(c_in, 8)
    feat_dim = h * w * NUM_JOINTS          # K order (H, W, J) — matches kernel
    np_heads = _round_up(N_HEADS, 128)     # 384

    def dense(k, shape):
        return 0.02 * jax.random.normal(k, shape, jnp.float32)

    # 3x3 conv: logical [9, c_in, C_MID] packed into ONE [9*cp, 128] bf16
    # matrix (row = tap*cp + in_channel), so the conv is a single MXU matmul.
    w1 = dense(ks[0], (9, c_in, C_MID))
    w1p = jnp.zeros((9, cp, 128), jnp.float32).at[:, :c_in, :C_MID].set(w1)
    w1p = w1p.reshape(9 * cp, 128)
    # 1x1 conv: logical [C_MID, NUM_JOINTS] -> stored [128, 128] bf16.
    w2 = dense(ks[1], (C_MID, NUM_JOINTS))
    w2p = jnp.zeros((128, 128), jnp.float32).at[:C_MID, :NUM_JOINTS].set(w2)
    # Fused dense heads: [feat_dim, n3d + n2d + ngc] -> [feat_dim, 384] bf16.
    # Rows are in (H, W, J) order to match the backbone's flat output.
    wh = jnp.concatenate([dense(ks[2], (feat_dim, N_3D)),
                          dense(ks[3], (feat_dim, N_2D)),
                          dense(ks[4], (feat_dim, N_GC))], axis=1)
    whp = jnp.zeros((feat_dim, np_heads), jnp.float32).at[:, :N_HEADS].set(wh)

    return {
        "w_conv1": w1p.astype(jnp.bfloat16),
        "b_conv1": jnp.zeros((1, 128), jnp.float32),
        "w_conv2": w2p.astype(jnp.bfloat16),
        "b_conv2": jnp.zeros((1, 128), jnp.float32),
        "w_heads": whp.astype(jnp.bfloat16),
        "b_heads": jnp.zeros((1, np_heads), jnp.float32),
    }


# ----------------------------------- main ----------------------------------- #

if __name__ == "__main__":
    B, C, H, W = 2, 4, 16, 16
    key = jax.random.PRNGKey(0)
    k_img, k_view, k_param = jax.random.split(key, 3)

    raw_images = jax.random.normal(k_img, (B, C, H, W), jnp.float32)   # NCHW
    views1 = jax.random.normal(k_view, (B, C, H, W), jnp.float32)      # NCHW
    meta1 = {}

    params = init_params(k_param, C, H, W)

    pred_3d, pred_2d, all_heatmaps, grid_centers, face_images = \
        pose_model_forward(params, raw_images, views1, meta1)

    outputs = [pred_2d, face_images] + list(all_heatmaps)
    if pred_3d is not None:
        outputs.append(pred_3d)
    if grid_centers is not None:
        outputs.append(grid_centers)
    jax.block_until_ready(outputs)

    assert pred_3d is None or pred_3d.shape[1:] == (NUM_JOINTS, 5)
    assert grid_centers is None or grid_centers.shape[-1] == 5
    assert all_heatmaps[0].shape == (B, NUM_JOINTS, H, W)

    print("KERNEL_OK")
</pallas_src>

<mosaic_0001>
module attributes {stable_mosaic.version = 11 : i64} {
  func.func @_backbone_kernel(%arg0: i32, %arg1: memref<2x256x72xf32, #tpu.memory_space<vmem>>, %arg2: memref<72x128xbf16, #tpu.memory_space<vmem>>, %arg3: memref<1x128xf32, #tpu.memory_space<vmem>>, %arg4: memref<128x128xbf16, #tpu.memory_space<vmem>>, %arg5: memref<1x128xf32, #tpu.memory_space<vmem>>, %arg6: memref<2x256x15xf32, #tpu.memory_space<vmem>>) attributes {dimension_semantics = [#tpu.dimension_semantics<parallel>], iteration_bounds = array<i64: 2>, scalar_prefetch = 0 : i64, scratch_operands = 0 : i64, tpu.core_type = #tpu.core_type<tc>, window_params = [{transform_indices = @transform_0, window_bounds = array<i64: 2, 256, 72>}, {pipeline_mode = #tpu.pipeline_mode<synchronous>, transform_indices = @transform_1, window_bounds = array<i64: 72, 128>}, {pipeline_mode = #tpu.pipeline_mode<synchronous>, transform_indices = @transform_2, window_bounds = array<i64: 1, 128>}, {pipeline_mode = #tpu.pipeline_mode<synchronous>, transform_indices = @transform_3, window_bounds = array<i64: 128, 128>}, {pipeline_mode = #tpu.pipeline_mode<synchronous>, transform_indices = @transform_4, window_bounds = array<i64: 1, 128>}, {transform_indices = @transform_5, window_bounds = array<i64: 2, 256, 15>}]} {
    %c0 = arith.constant 0 : index
    %c0_0 = arith.constant 0 : index
    %c0_1 = arith.constant 0 : index
    %0 = vector.load %arg1[%c0, %c0_0, %c0_1] : memref<2x256x72xf32, #tpu.memory_space<vmem>>, vector<2x256x72xf32>
    %1 = arith.truncf %0 : vector<2x256x72xf32> to vector<2x256x72xbf16>
    %2 = vector.shape_cast %1 : vector<2x256x72xbf16> to vector<512x72xbf16>
    %c0_2 = arith.constant 0 : index
    %c0_3 = arith.constant 0 : index
    %3 = vector.load %arg2[%c0_2, %c0_3] : memref<72x128xbf16, #tpu.memory_space<vmem>>, vector<72x128xbf16>
    %cst = arith.constant dense<0.000000e+00> : vector<512x128xf32>
    %4 = tpu.matmul %2, %3, %cst {dimension_numbers = #tpu.dot_dimension_numbers<[1], [0], [0], [1], [0, 0, 1, 1], [], []>} : vector<512x72xbf16>, vector<72x128xbf16>, vector<512x128xf32> -> vector<512x128xf32>
    %c0_4 = arith.constant 0 : index
    %c0_5 = arith.constant 0 : index
    %5 = vector.load %arg3[%c0_4, %c0_5] : memref<1x128xf32, #tpu.memory_space<vmem>>, vector<1x128xf32>
    %6 = vector.broadcast %5 : vector<1x128xf32> to vector<512x128xf32>
    %7 = arith.addf %4, %6 : vector<512x128xf32>
    %cst_6 = arith.constant 0.000000e+00 : f32
    %8 = vector.broadcast %cst_6 : f32 to vector<512x128xf32>
    %9 = arith.maximumf %7, %8 : vector<512x128xf32>
    %10 = arith.truncf %9 : vector<512x128xf32> to vector<512x128xbf16>
    %c0_7 = arith.constant 0 : index
    %c0_8 = arith.constant 0 : index
    %11 = vector.load %arg4[%c0_7, %c0_8] : memref<128x128xbf16, #tpu.memory_space<vmem>>, vector<128x128xbf16>
    %cst_9 = arith.constant dense<0.000000e+00> : vector<512x128xf32>
    %12 = tpu.matmul %10, %11, %cst_9 {dimension_numbers = #tpu.dot_dimension_numbers<[1], [0], [0], [1], [0, 0, 1, 1], [], []>} : vector<512x128xbf16>, vector<128x128xbf16>, vector<512x128xf32> -> vector<512x128xf32>
    %c0_10 = arith.constant 0 : index
    %c0_11 = arith.constant 0 : index
    %13 = vector.load %arg5[%c0_10, %c0_11] : memref<1x128xf32, #tpu.memory_space<vmem>>, vector<1x128xf32>
    %14 = vector.broadcast %13 : vector<1x128xf32> to vector<512x128xf32>
    %15 = arith.addf %12, %14 : vector<512x128xf32>
    %16 = vector.extract_strided_slice %15 {offsets = [0, 0], sizes = [512, 15], strides = [1, 1]} : vector<512x128xf32> to vector<512x15xf32>
    %17 = vector.shape_cast %16 : vector<512x15xf32> to vector<2x256x15xf32>
    %c0_12 = arith.constant 0 : index
    %c0_13 = arith.constant 0 : index
    %c0_14 = arith.constant 0 : index
    %18 = vector.load %arg6[%c0_12, %c0_13, %c0_14] : memref<2x256x15xf32, #tpu.memory_space<vmem>>, vector<2x256x15xf32>
    tpu.vector_store %arg6[%c0_12, %c0_13, %c0_14], %17 {strides = array<i32>} : memref<2x256x15xf32, #tpu.memory_space<vmem>>, vector<2x256x15xf32>,
    return
  }
  func.func @transform_0(%arg0: i32) -> (i32, i32, i32) {
    %c0_i32 = arith.constant 0 : i32
    %c0_i32_0 = arith.constant 0 : i32
    %c0_i32_1 = arith.constant 0 : i32
    return %arg0, %c0_i32, %c0_i32_0 : i32, i32, i32
  }
  func.func @transform_1(%arg0: i32) -> (i32, i32) {
    %c0_i32 = arith.constant 0 : i32
    %c0_i32_0 = arith.constant 0 : i32
    %c0_i32_1 = arith.constant 0 : i32
    return %c0_i32, %c0_i32_0 : i32, i32
  }
  func.func @transform_2(%arg0: i32) -> (i32, i32) {
    %c0_i32 = arith.constant 0 : i32
    %c0_i32_0 = arith.constant 0 : i32
    %c0_i32_1 = arith.constant 0 : i32
    return %c0_i32, %c0_i32_0 : i32, i32
  }
  func.func @transform_3(%arg0: i32) -> (i32, i32) {
    %c0_i32 = arith.constant 0 : i32
    %c0_i32_0 = arith.constant 0 : i32
    %c0_i32_1 = arith.constant 0 : i32
    return %c0_i32, %c0_i32_0 : i32, i32
  }
  func.func @transform_4(%arg0: i32) -> (i32, i32) {
    %c0_i32 = arith.constant 0 : i32
    %c0_i32_0 = arith.constant 0 : i32
    %c0_i32_1 = arith.constant 0 : i32
    return %c0_i32, %c0_i32_0 : i32, i32
  }
  func.func @transform_5(%arg0: i32) -> (i32, i32, i32) {
    %c0_i32 = arith.constant 0 : i32
    %c0_i32_0 = arith.constant 0 : i32
    %c0_i32_1 = arith.constant 0 : i32
    return %arg0, %c0_i32, %c0_i32_0 : i32, i32, i32
  }
}

module attributes {stable_mosaic.version = 11 : i64} {
  func.func @_matmul_bias_kernel(%arg0: i32, %arg1: i32, %arg2: memref<2x1920xf32, #tpu.memory_space<vmem>>, %arg3: memref<1920x384xbf16, #tpu.memory_space<vmem>>, %arg4: memref<1x384xf32, #tpu.memory_space<vmem>>, %arg5: memref<2x384xf32, #tpu.memory_space<vmem>>) attributes {dimension_semantics = [#tpu.dimension_semantics<parallel>, #tpu.dimension_semantics<arbitrary>], iteration_bounds = array<i64: 1, 2>, scalar_prefetch = 0 : i64, scratch_operands = 0 : i64, tpu.core_type = #tpu.core_type<tc>, window_params = [{transform_indices = @transform_0, window_bounds = array<i64: 2, 1920>}, {transform_indices = @transform_1, window_bounds = array<i64: 1920, 384>}, {pipeline_mode = #tpu.pipeline_mode<synchronous>, transform_indices = @transform_2, window_bounds = array<i64: 1, 384>}, {transform_indices = @transform_3, window_bounds = array<i64: 2, 384>}]} {
    %c0_i32 = arith.constant 0 : i32
    %0 = arith.cmpi eq, %arg1, %c0_i32 : i32
    %1 = arith.extui %0 : i1 to i32
    %c0_i32_0 = arith.constant 0 : i32
    %2 = arith.cmpi ne, %1, %c0_i32_0 : i32
    scf.if %2 {
      %c0_8 = arith.constant 0 : index
      %c0_9 = arith.constant 0 : index
      %10 = vector.load %arg4[%c0_8, %c0_9] : memref<1x384xf32, #tpu.memory_space<vmem>>, vector<1x384xf32>
      %11 = vector.shape_cast %10 : vector<1x384xf32> to vector<1x384xf32>
      %12 = vector.broadcast %11 : vector<1x384xf32> to vector<2x384xf32>
      %c0_10 = arith.constant 0 : index
      %c0_11 = arith.constant 0 : index
      %13 = vector.load %arg5[%c0_10, %c0_11] : memref<2x384xf32, #tpu.memory_space<vmem>>, vector<2x384xf32>
      tpu.vector_store %arg5[%c0_10, %c0_11], %12 {strides = array<i32>} : memref<2x384xf32, #tpu.memory_space<vmem>>, vector<2x384xf32>,
    } else {
    }
    %c0 = arith.constant 0 : index
    %c0_1 = arith.constant 0 : index
    %3 = vector.load %arg5[%c0, %c0_1] : memref<2x384xf32, #tpu.memory_space<vmem>>, vector<2x384xf32>
    %c0_2 = arith.constant 0 : index
    %c0_3 = arith.constant 0 : index
    %4 = vector.load %arg2[%c0_2, %c0_3] : memref<2x1920xf32, #tpu.memory_space<vmem>>, vector<2x1920xf32>
    %5 = arith.truncf %4 : vector<2x1920xf32> to vector<2x1920xbf16>
    %c0_4 = arith.constant 0 : index
    %c0_5 = arith.constant 0 : index
    %6 = vector.load %arg3[%c0_4, %c0_5] : memref<1920x384xbf16, #tpu.memory_space<vmem>>, vector<1920x384xbf16>
    %cst = arith.constant dense<0.000000e+00> : vector<2x384xf32>
    %7 = tpu.matmul %5, %6, %cst {dimension_numbers = #tpu.dot_dimension_numbers<[1], [0], [0], [1], [0, 0, 1, 1], [], []>} : vector<2x1920xbf16>, vector<1920x384xbf16>, vector<2x384xf32> -> vector<2x384xf32>
    %8 = arith.addf %3, %7 : vector<2x384xf32>
    %c0_6 = arith.constant 0 : index
    %c0_7 = arith.constant 0 : index
    %9 = vector.load %arg5[%c0_6, %c0_7] : memref<2x384xf32, #tpu.memory_space<vmem>>, vector<2x384xf32>
    tpu.vector_store %arg5[%c0_6, %c0_7], %8 {strides = array<i32>} : memref<2x384xf32, #tpu.memory_space<vmem>>, vector<2x384xf32>,
    return
  }
  func.func @transform_0(%arg0: i32, %arg1: i32) -> (i32, i32) {
    %c0_i32 = arith.constant 0 : i32
    return %arg0, %arg1 : i32, i32
  }
  func.func @transform_1(%arg0: i32, %arg1: i32) -> (i32, i32) {
    %c0_i32 = arith.constant 0 : i32
    %c0_i32_0 = arith.constant 0 : i32
    return %arg1, %c0_i32 : i32, i32
  }
  func.func @transform_2(%arg0: i32, %arg1: i32) -> (i32, i32) {
    %c0_i32 = arith.constant 0 : i32
    %c0_i32_0 = arith.constant 0 : i32
    %c0_i32_1 = arith.constant 0 : i32
    return %c0_i32, %c0_i32_0 : i32, i32
  }
  func.func @transform_3(%arg0: i32, %arg1: i32) -> (i32, i32) {
    %c0_i32 = arith.constant 0 : i32
    %c0_i32_0 = arith.constant 0 : i32
    return %arg0, %c0_i32 : i32, i32
  }
}

</mosaic_0001>

<bundles_post_ra>
// kernel: posenet_forward.2
= control target key start
LH: loop header
LB: loop body
LE: loop exit
PB: predicated region body
PF: predicated region fallthrough
CT: control target
= control target key end

     0   :  { %s1695_s18 = smov 0   ;;  %s2124_s0 = inlined_call_operand.vmem [shape: f32[4,256,72], index: 0, kind: input, shape index: {}]   ;;  %s2125_s1 = inlined_call_operand.vmem [shape: bf16[72,128], index: 1, kind: input, shape index: {}]   ;;  %s2126_s2 = inlined_call_operand.vmem [shape: f32[1,128], index: 2, kind: input, shape index: {}]   ;;  %s2127_s3 = inlined_call_operand.vmem [shape: bf16[128,128], index: 3, kind: input, shape index: {}]   ;;  %s2128_s4 = inlined_call_operand.vmem [shape: f32[1,128], index: 4, kind: input, shape index: {}]   ;;  %s2129_s5 = inlined_call_operand.vmem [shape: f32[4,256,15], index: 5, kind: output, shape index: {}]  }
   0x1 LB: > { %s1342_s19 = sadd.s32 4294967295, %s1663_s18   ;;  %p1346_p0 = scmp.ge.s32.totalorder %s1663_s18, 1  ;;  %s1663_s18 = sphi %s1695_s18, %s15_s18  }
   0x2   : > { %p189_p1 = scmp.lt.s32.totalorder %s1663_s18, 3 }
   0x4   : > { %p190_p2 = pnand %p1346_p0, %p189_p1 }
   0x5   : > { %v1644_v0 = vld [vmem:[%s2125_s1] sm:$0xff] (!%p190_p2)   ;;  %v1645_v1 = vld [vmem:[%s2125_s1 + $0x8] sm:$0xff] (!%p190_p2)   ;;  %s1347_s24 = sshll.u32 (!%p190_p2), %s1342_s19, 1  ;;  %v1646_v2 = vld [vmem:[%s2125_s1 + $0x10] sm:$0xff] (!%p190_p2)   ;;  %vm373_vm0 = vcmask (!%p190_p2), 588800   ;;  %vm470_vm1 = vcmask (!%p190_p2), 1043456  }
   0x6   : > { %193 = sbr.rel (%p190_p2) target bundleno = 586 (0x24a), region = 40  ;;  %1481 = vmatprep.subr.bf16.mxu0 (!%p190_p2), %v1644_v0  ;;  %p220_p3 = scmp.lt.s32.totalorder (!%p190_p2), %s1347_s24, 3  ;;  %v1647_v3 = vld [vmem:[%s2125_s1 + $0x18] sm:$0xff] (!%p190_p2)   ;;  %v1648_v7 = vld [vmem:[%s2125_s1 + $0x20] ss:$0 sps:$4 sm:$0xff] (!%p190_p2)   ;;  %v1650_v23 = vld [vmem:[%s2127_s3 + $0x8] sm:$0xff] (!%p190_p2)  }
   0x7   : > { %1482 = vmatpush3.bf16.msra.mxu0 (!%p190_p2), %v1644_v0  ;;  %v472_v10 = vsel (!%p190_p2), %vm470_vm1, %v1648_v7, 0  ;;  %v1649_v22 = vld [vmem:[%s2127_s3] sm:$0xff] (!%p190_p2)   ;;  %v1651_v27 = vld [vmem:[%s2127_s3 + $0x10] sm:$0xff] (!%p190_p2)   ;;  %v1652_v30 = vld [vmem:[%s2127_s3 + $0x18] sm:$0xff] (!%p190_p2)   ;;  %vm1219_vm2 = vcmask (!%p190_p2), 121856  }
   0x8   : > { %1483 = vmatprep.subr.bf16.mxu0 (!%p190_p2), %v1645_v1  ;;  %1555 = vmatprep.subr.bf16.mxu1 (!%p190_p2), %v1649_v22  ;;  %v1653_v35 = vld [vmem:[%s2127_s3 + $0x20] sm:$0xff] (!%p190_p2)   ;;  %v1654_v38 = vld [vmem:[%s2127_s3 + $0x28] sm:$0xff] (!%p190_p2)  }
   0x9   : > { %1556 = vmatpush3.bf16.msra.mxu1 (!%p190_p2), %v1649_v22  ;;  %v1655_v22 = vld [vmem:[%s2127_s3 + $0x30] sm:$0xff] (!%p190_p2)  }
   0xa   : > { %1557 = vmatprep.subr.bf16.mxu1 (!%p190_p2), %v1650_v23 }
   0xb   : > { %1484 = vmatpush3.bf16.msra.mxu0 (!%p190_p2), %v1645_v1 }
   0xc   : > { %1485 = vmatprep.subr.bf16.mxu0 (!%p190_p2), %v1646_v2 }
   0xd   : > { %s2131_s24 = smov (!%p220_p3, %s1347_s24), 3  ;;  %1558 = vmatpush3.bf16.msra.mxu1 %v1650_v23 }
   0xe   : > { %s1402_s27 = sshll.u32 %s2131_s24, 8  ;;  %1559 = vmatprep.subr.bf16.mxu1 %v1651_v27 }
   0xf   : > { %s1720_s30 = scalar_lea.vmem %s2124_s0, %s1402_s27  ;;  %1486 = vmatpush3.bf16.msra.mxu0 %v1646_v2  ;;  %s1927_s10 = scalar_lea.vmem %s2129_s5, %s1402_s27 }
  0x10   : > { %v234_v4 = vld [vmem:[%s1720_s30] sm:$0xff]  ;;  %v235_v5 = vld [vmem:[%s1720_s30 + $0x8] sm:$0xff]  ;;  %1487 = vmatprep.subr.bf16.mxu0 %v1647_v3  ;;  %v236_v8 = vld [vmem:[%s1720_s30 + $0x10] sm:$0xff] }
  0x11   : > { %v298_v6 = vpack.c.bf16 %v235_v5, %v234_v4  ;;  %v237_v9 = vld [vmem:[%s1720_s30 + $0x18] sm:$0xff]  ;;  %v238_v11 = vld [vmem:[%s1720_s30 + $0x20] sm:$0xff]  ;;  %v239_v12 = vld [vmem:[%s1720_s30 + $0x28] sm:$0xff]  ;;  %1560 = vmatpush3.bf16.msra.mxu1 %v1651_v27 }
  0x12   : > { %v299_v13 = vpack.c.bf16 %v237_v9, %v236_v8  ;;  %v300_v14 = vpack.c.bf16 %v239_v12, %v238_v11  ;;  %v240_v15 = vld [vmem:[%s1720_s30 + $0x30] sm:$0xff]  ;;  %v241_v16 = vld [vmem:[%s1720_s30 + $0x38] sm:$0xff]  ;;  %v242_v17 = vld [vmem:[%s1720_s30 + $0x40] sm:$0xff]  ;;  %1561 = vmatprep.subr.bf16.mxu1 %v1652_v30 }
  0x13   : > { %1491 = vmatprep.mubr.msk.bf16.mxu0 %vm373_vm0, %v298_v6  ;;  %1488 = vmatpush3.bf16.msra.mxu0 %v1647_v3  ;;  %v243_v18 = vld [vmem:[%s1720_s30 + $0x48] sm:$0xff]  ;;  %v301_v19 = vpack.c.bf16 %v241_v16, %v240_v15  ;;  %v244_v21 = vld [vmem:[%s1720_s30 + $0x50] sm:$0xff]  ;;  %v245_v24 = vld [vmem:[%s1720_s30 + $0x58] sm:$0xff] }
  0x14   : > { %1635 = vmatprep.subr.msk.bf16.mxu0 %vm470_vm1, %v1648_v7  ;;  %v302_v20 = vpack.c.bf16 %v243_v18, %v242_v17  ;;  %v246_v25 = vld [vmem:[%s1720_s30 + $0x60] sm:$0xff]  ;;  %v247_v26 = vld [vmem:[%s1720_s30 + $0x68] sm:$0xff]  ;;  %v303_v28 = vpack.c.bf16 %v245_v24, %v244_v21  ;;  %v248_v31 = vld [vmem:[%s1720_s30 + $0x70] sm:$0xff] }
  0x15   : > { %v304_v29 = vpack.c.bf16 %v247_v26, %v246_v25  ;;  %v249_v32 = vld [vmem:[%s1720_s30 + $0x78] sm:$0xff]  ;;  %v250_v33 = vld [vmem:[%s1720_s30 + $0x80] sm:$0xff]  ;;  %v251_v34 = vld [vmem:[%s1720_s30 + $0x88] sm:$0xff]  ;;  %1562 = vmatpush3.bf16.msra.mxu1 %v1652_v30 }
  0x16   : > { %v305_v36 = vpack.c.bf16 %v249_v32, %v248_v31  ;;  %v306_v37 = vpack.c.bf16 %v251_v34, %v250_v33  ;;  %1563 = vmatprep.subr.bf16.mxu1 %v1653_v35  ;;  %v252_v39 = vld [vmem:[%s1720_s30 + $0x90] sm:$0xff]  ;;  %v253_v40 = vld [vmem:[%s1720_s30 + $0x98] sm:$0xff]  ;;  %v254_v41 = vld [vmem:[%s1720_s30 + $0xa0] sm:$0xff] }
  0x17   : > { %1490 = vmatpush3.bf16.msra.mxu0 %v472_v10  ;;  %v255_v42 = vld [vmem:[%s1720_s30 + $0xa8] sm:$0xff]  ;;  %v307_v43 = vpack.c.bf16 %v253_v40, %v252_v39  ;;  %v256_v45 = vld [vmem:[%s1720_s30 + $0xb0] sm:$0xff]  ;;  %v257_v46 = vld [vmem:[%s1720_s30 + $0xb8] sm:$0xff] }
  0x18   : > { %v308_v44 = vpack.c.bf16 %v255_v42, %v254_v41  ;;  %v258_v47 = vld [vmem:[%s1720_s30 + $0xc0] sm:$0xff]  ;;  %v259_v48 = vld [vmem:[%s1720_s30 + $0xc8] sm:$0xff]  ;;  %v309_v49 = vpack.c.bf16 %v257_v46, %v256_v45  ;;  %v260_v51 = vld [vmem:[%s1720_s30 + $0xd0] sm:$0xff] }
  0x19   : > { %1564 = vmatpush3.bf16.msra.mxu1 %v1653_v35  ;;  %v310_v50 = vpack.c.bf16 %v259_v48, %v258_v47  ;;  %v261_v52 = vld [vmem:[%s1720_s30 + $0xd8] sm:$0xff]  ;;  %v262_v53 = vld [vmem:[%s1720_s30 + $0xe0] sm:$0xff]  ;;  %v263_v54 = vld [vmem:[%s1720_s30 + $0xe8] sm:$0xff] }
  0x1a   : > { %1492 = vmatmul.mubr.msk.bf16.vlgmr.msra.gmra.mrb[0].mxu0 %vm373_vm0, %v299_v13  ;;  %1565 = vmatprep.subr.bf16.mxu1 %v1654_v38  ;;  %v311_v55 = vpack.c.bf16 %v261_v52, %v260_v51  ;;  %v312_v56 = vpack.c.bf16 %v263_v54, %v262_v53  ;;  %v264_v57 = vld [vmem:[%s1720_s30 + $0xf0] sm:$0xff]  ;;  %v265_v58 = vld [vmem:[%s1720_s30 + $0xf8] sm:$0xff]  ;;  %v266_v59 = vld [vmem:[%s1720_s30 + $0x100] sm:$0xff] }
  0x1b   : > { %1495 = vmatprep.mubr.msk.bf16.mxu0 %vm373_vm0, %v300_v14  ;;  %v267_v60 = vld [vmem:[%s1720_s30 + $0x108] sm:$0xff]  ;;  %v313_v61 = vpack.c.bf16 %v265_v58, %v264_v57  ;;  %v268_v63 = vld [vmem:[%s1720_s30 + $0x110] sm:$0xff]  ;;  %v269_v0 = vld [vmem:[%s1720_s30 + $0x118] sm:$0xff] }
  0x1c   : > { %v314_v62 = vpack.c.bf16 %v267_v60, %v266_v59  ;;  %v270_v1 = vld [vmem:[%s1720_s30 + $0x120] sm:$0xff]  ;;  %v271_v2 = vld [vmem:[%s1720_s30 + $0x128] sm:$0xff]  ;;  %v315_v3 = vpack.c.bf16 %v269_v0, %v268_v63  ;;  %v272_v5 = vld [vmem:[%s1720_s30 + $0x130] sm:$0xff] }
  0x1d   : > { %1566 = vmatpush3.bf16.msra.mxu1 %v1654_v38  ;;  %v316_v4 = vpack.c.bf16 %v271_v2, %v270_v1  ;;  %v273_v6 = vld [vmem:[%s1720_s30 + $0x138] sm:$0xff]  ;;  %v274_v7 = vld [vmem:[%s1720_s30 + $0x140] sm:$0xff]  ;;  %v275_v8 = vld [vmem:[%s1720_s30 + $0x148] sm:$0xff] }
  0x1e   : > { %v317_v9 = vpack.c.bf16 %v273_v6, %v272_v5  ;;  %v318_v10 = vpack.c.bf16 %v275_v8, %v274_v7  ;;  %v276_v11 = vld [vmem:[%s1720_s30 + $0x150] sm:$0xff]  ;;  %v277_v12 = vld [vmem:[%s1720_s30 + $0x158] sm:$0xff]  ;;  %v278_v13 = vld [vmem:[%s1720_s30 + $0x160] sm:$0xff]  ;;  %1567 = vmatprep.subr.bf16.mxu1 %v1655_v22 }
  0x1f   : > { %v279_v14 = vld [vmem:[%s1720_s30 + $0x168] sm:$0xff]  ;;  %v319_v15 = vpack.c.bf16 %v277_v12, %v276_v11  ;;  %v280_v17 = vld [vmem:[%s1720_s30 + $0x170] sm:$0xff]  ;;  %v281_v18 = vld [vmem:[%s1720_s30 + $0x178] sm:$0xff] }
  0x20   : > { %v320_v16 = vpack.c.bf16 %v279_v14, %v278_v13  ;;  %v321_v21 = vpack.c.bf16 %v281_v18, %v280_v17  ;;  %v1656_v24 = vld [vmem:[%s2127_s3 + $0x38] sm:$0xff]   ;;  %v284_v25 = vld [vmem:[%s1720_s30 + $0x190] sm:$0xff]  ;;  %v286_v27 = vld [vmem:[%s1720_s30 + $0x1a0] sm:$0xff] }
  0x21   : > { %1568 = vmatpush3.bf16.msra.mxu1 %v1655_v22  ;;  %v285_v26 = vld [vmem:[%s1720_s30 + $0x198] sm:$0xff]  ;;  %v288_v31 = vld [vmem:[%s1720_s30 + $0x1b0] sm:$0xff]  ;;  %v290_v33 = vld [vmem:[%s1720_s30 + $0x1c0] sm:$0xff] }
  0x22   : > { %1496 = vmatmul.mubr.msk.bf16.gmra.mrb[4].mxu0 %vm373_vm0, %v301_v19  ;;  %v282_v19 = vld [vmem:[%s1720_s30 + $0x180] sm:$0xff]  ;;  %1569 = vmatprep.subr.bf16.mxu1 %v1656_v24  ;;  %v289_v32 = vld [vmem:[%s1720_s30 + $0x1b8] sm:$0xff]  ;;  %v291_v34 = vld [vmem:[%s1720_s30 + $0x1c8] sm:$0xff] }
  0x23   : > { %1499 = vmatprep.mubr.msk.bf16.mxu0 %vm373_vm0, %v302_v20  ;;  %v283_v20 = vld [vmem:[%s1720_s30 + $0x188] sm:$0xff]  ;;  %v325_v35 = vpack.c.bf16 %v289_v32, %v288_v31  ;;  %v293_v38 = vld [vmem:[%s1720_s30 + $0x1d8] sm:$0xff]  ;;  %v294_v39 = vld [vmem:[%s1720_s30 + $0x1e0] sm:$0xff] }
  0x24   : > { %v322_v23 = vpack.c.bf16 %v283_v20, %v282_v19  ;;  %v295_v40 = vld [vmem:[%s1720_s30 + $0x1e8] sm:$0xff]  ;;  %v1851_v46 = vld [vmem:[%s2126_s2] ss:$0 sm:$0xff] }
  0x25   : > { %1570 = vmatpush3.bf16.msra.mxu1 %v1656_v24  ;;  %v328_v42 = vpack.c.bf16 %v295_v40, %v294_v39 }
  0x2a   : > { %1500 = vmatmul.mubr.msk.bf16.gmra.mrb[8].mxu0 %vm373_vm0, %v303_v28  ;;  %v287_v28 = vld [vmem:[%s1720_s30 + $0x1a8] sm:$0xff] }
  0x2b   : > { %1503 = vmatprep.mubr.msk.bf16.mxu0 %vm373_vm0, %v304_v29  ;;  %v323_v29 = vpack.c.bf16 %v285_v26, %v284_v25  ;;  %v324_v30 = vpack.c.bf16 %v287_v28, %v286_v27 }
  0x32   : > { %1504 = vmatmul.mubr.msk.bf16.gmra.mrb[12].mxu0 %vm373_vm0, %v305_v36  ;;  %v326_v36 = vpack.c.bf16 %v291_v34, %v290_v33 }
  0x33   : > { %1507 = vmatprep.mubr.msk.bf16.mxu0 %vm373_vm0, %v306_v37  ;;  %v292_v37 = vld [vmem:[%s1720_s30 + $0x1d0] sm:$0xff] }
  0x34   : > { %v327_v41 = vpack.c.bf16 %v293_v38, %v292_v37 }
  0x3a   : > { %1508 = vmatmul.mubr.msk.bf16.gmra.mrb[16].mxu0 %vm373_vm0, %v307_v43  ;;  %v296_v43 = vld [vmem:[%s1720_s30 + $0x1f0] sm:$0xff] }
  0x3b   : > { %1511 = vmatprep.mubr.msk.bf16.mxu0 %vm373_vm0, %v308_v44  ;;  %v297_v44 = vld [vmem:[%s1720_s30 + $0x1f8] sm:$0xff] }
  0x3c   : > { %v329_v45 = vpack.c.bf16 %v297_v44, %v296_v43 }
  0x42   : > { %1512 = vmatmul.mubr.msk.bf16.gmra.mrb[20].mxu0 %vm373_vm0, %v309_v49 }
  0x43   : > { %1515 = vmatprep.mubr.msk.bf16.mxu0 %vm373_vm0, %v310_v50 }
  0x4a   : > { %1516 = vmatmul.mubr.msk.bf16.gmra.mrb[24].mxu0 %vm373_vm0, %v311_v55 }
  0x4b   : > { %1519 = vmatprep.mubr.msk.bf16.mxu0 %vm373_vm0, %v312_v56 }
  0x52   : > { %1520 = vmatmul.mubr.msk.bf16.gmra.mrb[28].mxu0 %vm373_vm0, %v313_v61 }
  0x53   : > { %1523 = vmatprep.mubr.msk.bf16.mxu0 %vm373_vm0, %v314_v62 }
  0x5a   : > { %1524 = vmatmul.mubr.msk.bf16.gmra.mrb[32].mxu0 %vm373_vm0, %v315_v3 }
  0x5b   : > { %1527 = vmatprep.mubr.msk.bf16.mxu0 %vm373_vm0, %v316_v4 }
  0x62   : > { %1528 = vmatmul.mubr.msk.bf16.gmra.mrb[36].mxu0 %vm373_vm0, %v317_v9 }
  0x63   : > { %1531 = vmatprep.mubr.msk.bf16.mxu0 %vm373_vm0, %v318_v10 }
  0x6a   : > { %1532 = vmatmul.mubr.msk.bf16.gmra.mrb[40].mxu0 %vm373_vm0, %v319_v15 }
  0x6b   : > { %1535 = vmatprep.mubr.msk.bf16.mxu0 %vm373_vm0, %v320_v16 }
  0x72   : > { %1536 = vmatmul.mubr.msk.bf16.gmra.mrb[44].mxu0 %vm373_vm0, %v321_v21 }
  0x73   : > { %1539 = vmatprep.mubr.msk.bf16.mxu0 %vm373_vm0, %v322_v23 }
  0x7a   : > { %1540 = vmatmul.mubr.msk.bf16.gmra.mrb[48].mxu0 %vm373_vm0, %v323_v29 }
  0x7b   : > { %1543 = vmatprep.mubr.msk.bf16.mxu0 %vm373_vm0, %v324_v30 }
  0x82   : > { %1544 = vmatmul.mubr.msk.bf16.gmra.mrb[52].mxu0 %vm373_vm0, %v325_v35 }
  0x83   : > { %1547 = vmatprep.mubr.msk.bf16.mxu0 %vm373_vm0, %v326_v36 }
  0x8a   : > { %1548 = vmatmul.mubr.msk.bf16.gmra.mrb[56].mxu0 %vm373_vm0, %v327_v41 }
  0x8b   : > { %1551 = vmatprep.mubr.msk.bf16.mxu0 %vm373_vm0, %v328_v42 }
  0x92   : > { %1552 = vmatmul.mubr.msk.bf16.gmra.mrb[60].mxu0 %vm373_vm0, %v329_v45 }
  0xed   : > { %v1493_v47 = vpop.f32.mrb[0].mxu0 }
  0xee   : > { %v517_v48 = vadd.f32 %v1493_v47, %v1851_v46  ;;  %v508_v49 = vpop.f32.mrb[1].mxu0 }
  0xef   : > { %v509_v50 = vadd.f32 %v1851_v46, %v508_v49  ;;  %v1494_v51 = vpop.f32.mrb[2].mxu0 }
  0xf0   : > { %v520_v52 = vadd.f32 %v1494_v51, %v1851_v46  ;;  %v511_v53 = vpop.f32.mrb[3].mxu0  ;;  %v765_v55 = vmax.f32 %v517_v48, 0.0 }
  0xf1   : > { %v512_v54 = vadd.f32 %v1851_v46, %v511_v53  ;;  %v763_v57 = vmax.f32 %v509_v50, 0.0 }
  0xf2   : > { %v766_v56 = vmax.f32 %v520_v52, 0.0 }
  0xf3   : > { %v764_v58 = vmax.f32 %v512_v54, 0.0 }
  0xf4   : > { %v828_v59 = vpack.c.bf16 %v766_v56, %v765_v55 }
  0xf5   : > { %v1497_v60 = vpop.f32.mrb[4].mxu0  ;;  %v827_v61 = vpack.c.bf16 %v764_v58, %v763_v57 }
  0xf6   : > { %v533_v62 = vadd.f32 %v1497_v60, %v1851_v46  ;;  %v524_v63 = vpop.f32.mrb[5].mxu0 }
  0xf7   : > { %v525_v0 = vadd.f32 %v1851_v46, %v524_v63  ;;  %v1498_v1 = vpop.f32.mrb[6].mxu0  ;;  %1571 = vmatprep.mubr.bf16.mxu1 %v827_v61 }
  0xf8   : > { %v536_v2 = vadd.f32 %v1498_v1, %v1851_v46  ;;  %v527_v3 = vpop.f32.mrb[7].mxu0  ;;  %1572 = vmatmul.mubr.bf16.vlgmr.msra.gmra.mrb[0].mxu1 %v828_v59  ;;  %v769_v5 = vmax.f32 %v533_v62, 0.0 }
  0xf9   : > { %v528_v4 = vadd.f32 %v1851_v46, %v527_v3  ;;  %v767_v7 = vmax.f32 %v525_v0, 0.0 }
  0xfa   : > { %v770_v6 = vmax.f32 %v536_v2, 0.0 }
  0xfb   : > { %v768_v8 = vmax.f32 %v528_v4, 0.0 }
  0xfc   : > { %v830_v9 = vpack.c.bf16 %v770_v6, %v769_v5 }
  0xfd   : > { %v829_v10 = vpack.c.bf16 %v768_v8, %v767_v7  ;;  %v1501_v11 = vpop.f32.mrb[8].mxu0 }
  0xfe   : > { %v549_v12 = vadd.f32 %v1501_v11, %v1851_v46  ;;  %v540_v13 = vpop.f32.mrb[9].mxu0 }
  0xff   : > { %v541_v14 = vadd.f32 %v1851_v46, %v540_v13  ;;  %v1502_v15 = vpop.f32.mrb[10].mxu0  ;;  %1575 = vmatprep.mubr.bf16.mxu1 %v829_v10 }
 0x100   : > { %v552_v16 = vadd.f32 %v1502_v15, %v1851_v46  ;;  %v543_v17 = vpop.f32.mrb[11].mxu0  ;;  %1576 = vmatmul.mubr.bf16.gmra.mrb[4].mxu1 %v830_v9  ;;  %v773_v19 = vmax.f32 %v549_v12, 0.0 }
 0x101   : > { %v544_v18 = vadd.f32 %v1851_v46, %v543_v17  ;;  %v771_v21 = vmax.f32 %v541_v14, 0.0 }
 0x102   : > { %v774_v20 = vmax.f32 %v552_v16, 0.0 }
 0x103   : > { %v772_v22 = vmax.f32 %v544_v18, 0.0 }
 0x104   : > { %v832_v23 = vpack.c.bf16 %v774_v20, %v773_v19 }
 0x105   : > { %v831_v24 = vpack.c.bf16 %v772_v22, %v771_v21  ;;  %v1505_v25 = vpop.f32.mrb[12].mxu0 }
 0x106   : > { %v565_v26 = vadd.f32 %v1505_v25, %v1851_v46  ;;  %v556_v27 = vpop.f32.mrb[13].mxu0 }
 0x107   : > { %v557_v28 = vadd.f32 %v1851_v46, %v556_v27  ;;  %v1506_v29 = vpop.f32.mrb[14].mxu0  ;;  %1579 = vmatprep.mubr.bf16.mxu1 %v831_v24 }
 0x108   : > { %v568_v30 = vadd.f32 %v1506_v29, %v1851_v46  ;;  %v559_v31 = vpop.f32.mrb[15].mxu0  ;;  %1580 = vmatmul.mubr.bf16.gmra.mrb[8].mxu1 %v832_v23  ;;  %v777_v33 = vmax.f32 %v565_v26, 0.0 }
 0x109   : > { %v560_v32 = vadd.f32 %v1851_v46, %v559_v31  ;;  %v775_v35 = vmax.f32 %v557_v28, 0.0 }
 0x10a   : > { %v778_v34 = vmax.f32 %v568_v30, 0.0 }
 0x10b   : > { %v776_v36 = vmax.f32 %v560_v32, 0.0 }
 0x10c   : > { %v834_v37 = vpack.c.bf16 %v778_v34, %v777_v33 }
 0x10d   : > { %v833_v38 = vpack.c.bf16 %v776_v36, %v775_v35  ;;  %v1509_v39 = vpop.f32.mrb[16].mxu0 }
 0x10e   : > { %v581_v40 = vadd.f32 %v1509_v39, %v1851_v46  ;;  %v572_v41 = vpop.f32.mrb[17].mxu0 }
 0x10f   : > { %v573_v42 = vadd.f32 %v1851_v46, %v572_v41  ;;  %v1510_v43 = vpop.f32.mrb[18].mxu0  ;;  %1583 = vmatprep.mubr.bf16.mxu1 %v833_v38 }
 0x110   : > { %v584_v44 = vadd.f32 %v1510_v43, %v1851_v46  ;;  %v575_v45 = vpop.f32.mrb[19].mxu0  ;;  %1584 = vmatmul.mubr.bf16.gmra.mrb[12].mxu1 %v834_v37  ;;  %v781_v48 = vmax.f32 %v581_v40, 0.0 }
 0x111   : > { %v576_v47 = vadd.f32 %v1851_v46, %v575_v45  ;;  %v779_v50 = vmax.f32 %v573_v42, 0.0 }
 0x112   : > { %v782_v49 = vmax.f32 %v584_v44, 0.0 }
 0x113   : > { %v780_v51 = vmax.f32 %v576_v47, 0.0 }
 0x114   : > { %v836_v52 = vpack.c.bf16 %v782_v49, %v781_v48 }
 0x115   : > { %v835_v53 = vpack.c.bf16 %v780_v51, %v779_v50  ;;  %v1513_v54 = vpop.f32.mrb[20].mxu0 }
 0x116   : > { %v597_v55 = vadd.f32 %v1513_v54, %v1851_v46  ;;  %v588_v56 = vpop.f32.mrb[21].mxu0 }
 0x117   : > { %v589_v57 = vadd.f32 %v1851_v46, %v588_v56  ;;  %v1514_v58 = vpop.f32.mrb[22].mxu0  ;;  %1587 = vmatprep.mubr.bf16.mxu1 %v835_v53 }
 0x118   : > { %v600_v59 = vadd.f32 %v1514_v58, %v1851_v46  ;;  %v591_v60 = vpop.f32.mrb[23].mxu0  ;;  %1588 = vmatmul.mubr.bf16.gmra.mrb[16].mxu1 %v836_v52  ;;  %v785_v62 = vmax.f32 %v597_v55, 0.0 }
 0x119   : > { %v592_v61 = vadd.f32 %v1851_v46, %v591_v60  ;;  %v783_v0 = vmax.f32 %v589_v57, 0.0 }
 0x11a   : > { %v786_v63 = vmax.f32 %v600_v59, 0.0 }
 0x11b   : > { %v784_v1 = vmax.f32 %v592_v61, 0.0 }
 0x11c   : > { %v838_v2 = vpack.c.bf16 %v786_v63, %v785_v62 }
 0x11d   : > { %v837_v3 = vpack.c.bf16 %v784_v1, %v783_v0  ;;  %v1517_v4 = vpop.f32.mrb[24].mxu0 }
 0x11e   : > { %v613_v5 = vadd.f32 %v1517_v4, %v1851_v46  ;;  %v604_v6 = vpop.f32.mrb[25].mxu0 }
 0x11f   : > { %v605_v7 = vadd.f32 %v1851_v46, %v604_v6  ;;  %v1518_v8 = vpop.f32.mrb[26].mxu0  ;;  %1591 = vmatprep.mubr.bf16.mxu1 %v837_v3 }
 0x120   : > { %v616_v9 = vadd.f32 %v1518_v8, %v1851_v46  ;;  %v607_v10 = vpop.f32.mrb[27].mxu0  ;;  %1592 = vmatmul.mubr.bf16.gmra.mrb[20].mxu1 %v838_v2  ;;  %v789_v12 = vmax.f32 %v613_v5, 0.0 }
 0x121   : > { %v608_v11 = vadd.f32 %v1851_v46, %v607_v10  ;;  %v787_v14 = vmax.f32 %v605_v7, 0.0 }
 0x122   : > { %v790_v13 = vmax.f32 %v616_v9, 0.0 }
 0x123   : > { %v788_v15 = vmax.f32 %v608_v11, 0.0 }
 0x124   : > { %v840_v16 = vpack.c.bf16 %v790_v13, %v789_v12 }
 0x125   : > { %v839_v17 = vpack.c.bf16 %v788_v15, %v787_v14  ;;  %v1521_v18 = vpop.f32.mrb[28].mxu0 }
 0x126   : > { %v629_v19 = vadd.f32 %v1521_v18, %v1851_v46  ;;  %v620_v20 = vpop.f32.mrb[29].mxu0 }
 0x127   : > { %v621_v21 = vadd.f32 %v1851_v46, %v620_v20  ;;  %v1522_v22 = vpop.f32.mrb[30].mxu0  ;;  %1595 = vmatprep.mubr.bf16.mxu1 %v839_v17 }
 0x128   : > { %v632_v23 = vadd.f32 %v1522_v22, %v1851_v46  ;;  %v623_v24 = vpop.f32.mrb[31].mxu0  ;;  %1596 = vmatmul.mubr.bf16.gmra.mrb[24].mxu1 %v840_v16  ;;  %v793_v26 = vmax.f32 %v629_v19, 0.0 }
 0x129   : > { %v624_v25 = vadd.f32 %v1851_v46, %v623_v24  ;;  %v791_v28 = vmax.f32 %v621_v21, 0.0 }
 0x12a   : > { %v794_v27 = vmax.f32 %v632_v23, 0.0 }
 0x12b   : > { %v792_v29 = vmax.f32 %v624_v25, 0.0 }
 0x12c   : > { %v842_v30 = vpack.c.bf16 %v794_v27, %v793_v26 }
 0x12d   : > { %v841_v31 = vpack.c.bf16 %v792_v29, %v791_v28  ;;  %v1525_v32 = vpop.f32.mrb[32].mxu0 }
 0x12e   : > { %v645_v33 = vadd.f32 %v1525_v32, %v1851_v46  ;;  %v636_v34 = vpop.f32.mrb[33].mxu0 }
 0x12f   : > { %v637_v35 = vadd.f32 %v1851_v46, %v636_v34  ;;  %v1526_v36 = vpop.f32.mrb[34].mxu0  ;;  %1599 = vmatprep.mubr.bf16.mxu1 %v841_v31 }
 0x130   : > { %v648_v37 = vadd.f32 %v1526_v36, %v1851_v46  ;;  %v639_v38 = vpop.f32.mrb[35].mxu0  ;;  %1600 = vmatmul.mubr.bf16.gmra.mrb[28].mxu1 %v842_v30  ;;  %v797_v40 = vmax.f32 %v645_v33, 0.0 }
 0x131   : > { %v640_v39 = vadd.f32 %v1851_v46, %v639_v38  ;;  %v795_v42 = vmax.f32 %v637_v35, 0.0 }
 0x132   : > { %v798_v41 = vmax.f32 %v648_v37, 0.0 }
 0x133   : > { %v796_v43 = vmax.f32 %v640_v39, 0.0 }
 0x134   : > { %v844_v44 = vpack.c.bf16 %v798_v41, %v797_v40 }
 0x135   : > { %v843_v45 = vpack.c.bf16 %v796_v43, %v795_v42  ;;  %v1529_v47 = vpop.f32.mrb[36].mxu0 }
 0x136   : > { %v661_v48 = vadd.f32 %v1529_v47, %v1851_v46  ;;  %v652_v49 = vpop.f32.mrb[37].mxu0 }
 0x137   : > { %v653_v50 = vadd.f32 %v1851_v46, %v652_v49  ;;  %v1530_v51 = vpop.f32.mrb[38].mxu0  ;;  %1603 = vmatprep.mubr.bf16.mxu1 %v843_v45 }
 0x138   : > { %v664_v52 = vadd.f32 %v1530_v51, %v1851_v46  ;;  %v655_v53 = vpop.f32.mrb[39].mxu0  ;;  %1604 = vmatmul.mubr.bf16.gmra.mrb[32].mxu1 %v844_v44  ;;  %v801_v55 = vmax.f32 %v661_v48, 0.0 }
 0x139   : > { %v656_v54 = vadd.f32 %v1851_v46, %v655_v53  ;;  %v799_v57 = vmax.f32 %v653_v50, 0.0 }
 0x13a   : > { %v802_v56 = vmax.f32 %v664_v52, 0.0 }
 0x13b   : > { %v800_v58 = vmax.f32 %v656_v54, 0.0 }
 0x13c   : > { %v846_v59 = vpack.c.bf16 %v802_v56, %v801_v55 }
 0x13d   : > { %v845_v60 = vpack.c.bf16 %v800_v58, %v799_v57  ;;  %v1533_v61 = vpop.f32.mrb[40].mxu0 }
 0x13e   : > { %v677_v62 = vadd.f32 %v1533_v61, %v1851_v46  ;;  %v668_v63 = vpop.f32.mrb[41].mxu0 }
 0x13f   : > { %v669_v0 = vadd.f32 %v1851_v46, %v668_v63  ;;  %v1534_v1 = vpop.f32.mrb[42].mxu0  ;;  %1607 = vmatprep.mubr.bf16.mxu1 %v845_v60 }
 0x140   : > { %v680_v2 = vadd.f32 %v1534_v1, %v1851_v46  ;;  %v671_v3 = vpop.f32.mrb[43].mxu0  ;;  %1608 = vmatmul.mubr.bf16.gmra.mrb[36].mxu1 %v846_v59  ;;  %v805_v5 = vmax.f32 %v677_v62, 0.0 }
 0x141   : > { %v672_v4 = vadd.f32 %v1851_v46, %v671_v3  ;;  %v803_v7 = vmax.f32 %v669_v0, 0.0 }
 0x142   : > { %v806_v6 = vmax.f32 %v680_v2, 0.0 }
 0x143   : > { %v804_v8 = vmax.f32 %v672_v4, 0.0 }
 0x144   : > { %v848_v9 = vpack.c.bf16 %v806_v6, %v805_v5 }
 0x145   : > { %v847_v10 = vpack.c.bf16 %v804_v8, %v803_v7  ;;  %v1537_v11 = vpop.f32.mrb[44].mxu0 }
 0x146   : > { %v693_v12 = vadd.f32 %v1537_v11, %v1851_v46  ;;  %v684_v13 = vpop.f32.mrb[45].mxu0 }
 0x147   : > { %v685_v14 = vadd.f32 %v1851_v46, %v684_v13  ;;  %v1538_v15 = vpop.f32.mrb[46].mxu0  ;;  %1611 = vmatprep.mubr.bf16.mxu1 %v847_v10 }
 0x148   : > { %v696_v16 = vadd.f32 %v1538_v15, %v1851_v46  ;;  %v687_v17 = vpop.f32.mrb[47].mxu0  ;;  %1612 = vmatmul.mubr.bf16.gmra.mrb[40].mxu1 %v848_v9  ;;  %v809_v19 = vmax.f32 %v693_v12, 0.0 }
 0x149   : > { %v688_v18 = vadd.f32 %v1851_v46, %v687_v17  ;;  %v807_v21 = vmax.f32 %v685_v14, 0.0 }
 0x14a   : > { %v810_v20 = vmax.f32 %v696_v16, 0.0 }
 0x14b   : > { %v808_v22 = vmax.f32 %v688_v18, 0.0  ;;  %v1920_v18 = vld [vmem:[%s2128_s4] ss:$0 sm:$0xff] }
 0x14c   : > { %v850_v23 = vpack.c.bf16 %v810_v20, %v809_v19 }
 0x14d   : > { %v849_v24 = vpack.c.bf16 %v808_v22, %v807_v21  ;;  %v1541_v25 = vpop.f32.mrb[48].mxu0 }
 0x14e   : > { %v709_v26 = vadd.f32 %v1541_v25, %v1851_v46  ;;  %v700_v27 = vpop.f32.mrb[49].mxu0 }
 0x14f   : > { %v701_v28 = vadd.f32 %v1851_v46, %v700_v27  ;;  %v1542_v29 = vpop.f32.mrb[50].mxu0  ;;  %1615 = vmatprep.mubr.bf16.mxu1 %v849_v24 }
 0x150   : > { %v712_v30 = vadd.f32 %v1542_v29, %v1851_v46  ;;  %v703_v31 = vpop.f32.mrb[51].mxu0  ;;  %1616 = vmatmul.mubr.bf16.gmra.mrb[44].mxu1 %v850_v23  ;;  %v813_v33 = vmax.f32 %v709_v26, 0.0 }
 0x151   : > { %v704_v32 = vadd.f32 %v1851_v46, %v703_v31  ;;  %v811_v35 = vmax.f32 %v701_v28, 0.0 }
 0x152   : > { %v814_v34 = vmax.f32 %v712_v30, 0.0 }
 0x153   : > { %v812_v36 = vmax.f32 %v704_v32, 0.0 }
 0x154   : > { %v852_v37 = vpack.c.bf16 %v814_v34, %v813_v33 }
 0x155   : > { %v851_v38 = vpack.c.bf16 %v812_v36, %v811_v35  ;;  %v1545_v39 = vpop.f32.mrb[52].mxu0 }
 0x156   : > { %v725_v40 = vadd.f32 %v1545_v39, %v1851_v46  ;;  %v716_v41 = vpop.f32.mrb[53].mxu0 }
 0x157   : > { %v717_v42 = vadd.f32 %v1851_v46, %v716_v41  ;;  %v1546_v43 = vpop.f32.mrb[54].mxu0  ;;  %1619 = vmatprep.mubr.bf16.mxu1 %v851_v38 }
 0x158   : > { %v728_v44 = vadd.f32 %v1546_v43, %v1851_v46  ;;  %v719_v45 = vpop.f32.mrb[55].mxu0  ;;  %1620 = vmatmul.mubr.bf16.gmra.mrb[48].mxu1 %v852_v37  ;;  %v817_v48 = vmax.f32 %v725_v40, 0.0 }
 0x159   : > { %v720_v47 = vadd.f32 %v1851_v46, %v719_v45  ;;  %v815_v50 = vmax.f32 %v717_v42, 0.0 }
 0x15a   : > { %v818_v49 = vmax.f32 %v728_v44, 0.0 }
 0x15b   : > { %v816_v51 = vmax.f32 %v720_v47, 0.0 }
 0x15c   : > { %v854_v52 = vpack.c.bf16 %v818_v49, %v817_v48 }
 0x15d   : > { %v853_v53 = vpack.c.bf16 %v816_v51, %v815_v50  ;;  %v1549_v54 = vpop.f32.mrb[56].mxu0 }
 0x15e   : > { %v741_v55 = vadd.f32 %v1549_v54, %v1851_v46  ;;  %v732_v56 = vpop.f32.mrb[57].mxu0 }
 0x15f   : > { %v733_v57 = vadd.f32 %v1851_v46, %v732_v56  ;;  %v1550_v58 = vpop.f32.mrb[58].mxu0  ;;  %1623 = vmatprep.mubr.bf16.mxu1 %v853_v53 }
 0x160   : > { %v744_v59 = vadd.f32 %v1550_v58, %v1851_v46  ;;  %v735_v60 = vpop.f32.mrb[59].mxu0  ;;  %1624 = vmatmul.mubr.bf16.gmra.mrb[52].mxu1 %v854_v52  ;;  %v821_v62 = vmax.f32 %v741_v55, 0.0 }
 0x161   : > { %v736_v61 = vadd.f32 %v1851_v46, %v735_v60  ;;  %v819_v0 = vmax.f32 %v733_v57, 0.0 }
 0x162   : > { %v822_v63 = vmax.f32 %v744_v59, 0.0 }
 0x163   : > { %v820_v1 = vmax.f32 %v736_v61, 0.0 }
 0x164   : > { %v856_v2 = vpack.c.bf16 %v822_v63, %v821_v62 }
 0x165   : > { %v855_v3 = vpack.c.bf16 %v820_v1, %v819_v0  ;;  %v1553_v4 = vpop.f32.mrb[60].mxu0 }
 0x166   : > { %v757_v5 = vadd.f32 %v1553_v4, %v1851_v46  ;;  %v748_v6 = vpop.f32.mrb[61].mxu0 }
 0x167   : > { %v749_v7 = vadd.f32 %v1851_v46, %v748_v6  ;;  %v1554_v8 = vpop.f32.mrb[62].mxu0  ;;  %1627 = vmatprep.mubr.bf16.mxu1 %v855_v3 }
 0x168   : > { %v760_v9 = vadd.f32 %v1554_v8, %v1851_v46  ;;  %v751_v10 = vpop.f32.mrb[63].mxu0  ;;  %1628 = vmatmul.mubr.bf16.gmra.mrb[56].mxu1 %v856_v2  ;;  %v825_v12 = vmax.f32 %v757_v5, 0.0 }
 0x169   : > { %v752_v11 = vadd.f32 %v1851_v46, %v751_v10  ;;  %v823_v14 = vmax.f32 %v749_v7, 0.0 }
 0x16a   : > { %v826_v13 = vmax.f32 %v760_v9, 0.0 }
 0x16b   : > { %v824_v15 = vmax.f32 %v752_v11, 0.0 }
 0x16c   : > { %v858_v16 = vpack.c.bf16 %v826_v13, %v825_v12 }
 0x16d   : > { %v857_v17 = vpack.c.bf16 %v824_v15, %v823_v14 }
 0x16f   : > { %1631 = vmatprep.mubr.bf16.mxu1 %v857_v17 }
 0x170   : > { %1632 = vmatmul.mubr.bf16.gmra.mrb[60].mxu1 %v858_v16 }
 0x1cb   : > { %v1573_v46 = vpop.f32.mrb[0].mxu1 }
 0x1cc   : > { %v973_v19 = vadd.f32 %v1573_v46, %v1920_v18  ;;  %v964_v20 = vpop.f32.mrb[1].mxu1 }
 0x1cd   : > { %v965_v21 = vadd.f32 %v1920_v18, %v964_v20  ;;  %v1574_v22 = vpop.f32.mrb[2].mxu1 }
 0x1ce   : > { %1222 = vst.msk [vmem:[%s1927_s10 + $0x10] sm:$0xff] %vm1219_vm2, %v973_v19  ;;  %v976_v23 = vadd.f32 %v1574_v22, %v1920_v18  ;;  %v967_v24 = vpop.f32.mrb[3].mxu1 }
 0x1cf   : > { %1220 = vst.msk [vmem:[%s1927_s10] sm:$0xff] %vm1219_vm2, %v965_v21  ;;  %v968_v25 = vadd.f32 %v1920_v18, %v967_v24 }
 0x1d0   : > { %1223 = vst.msk [vmem:[%s1927_s10 + $0x18] sm:$0xff] %vm1219_vm2, %v976_v23 }
 0x1d1   : > { %1221 = vst.msk [vmem:[%s1927_s10 + $0x8] sm:$0xff] %vm1219_vm2, %v968_v25 }
 0x1d3   : > { %v1577_v26 = vpop.f32.mrb[4].mxu1 }
 0x1d4   : > { %v989_v27 = vadd.f32 %v1577_v26, %v1920_v18  ;;  %v980_v28 = vpop.f32.mrb[5].mxu1 }
 0x1d5   : > { %v981_v29 = vadd.f32 %v1920_v18, %v980_v28  ;;  %v1578_v30 = vpop.f32.mrb[6].mxu1 }
 0x1d6   : > { %1226 = vst.msk [vmem:[%s1927_s10 + $0x30] sm:$0xff] %vm1219_vm2, %v989_v27  ;;  %v992_v31 = vadd.f32 %v1578_v30, %v1920_v18  ;;  %v983_v32 = vpop.f32.mrb[7].mxu1 }
 0x1d7   : > { %1224 = vst.msk [vmem:[%s1927_s10 + $0x20] sm:$0xff] %vm1219_vm2, %v981_v29  ;;  %v984_v33 = vadd.f32 %v1920_v18, %v983_v32 }
 0x1d8   : > { %1227 = vst.msk [vmem:[%s1927_s10 + $0x38] sm:$0xff] %vm1219_vm2, %v992_v31 }
 0x1d9   : > { %1225 = vst.msk [vmem:[%s1927_s10 + $0x28] sm:$0xff] %vm1219_vm2, %v984_v33 }
 0x1db   : > { %v1581_v34 = vpop.f32.mrb[8].mxu1 }
 0x1dc   : > { %v1005_v35 = vadd.f32 %v1581_v34, %v1920_v18  ;;  %v996_v36 = vpop.f32.mrb[9].mxu1 }
 0x1dd   : > { %v997_v37 = vadd.f32 %v1920_v18, %v996_v36  ;;  %v1582_v38 = vpop.f32.mrb[10].mxu1 }
 0x1de   : > { %1230 = vst.msk [vmem:[%s1927_s10 + $0x50] sm:$0xff] %vm1219_vm2, %v1005_v35  ;;  %v1008_v39 = vadd.f32 %v1582_v38, %v1920_v18  ;;  %v999_v40 = vpop.f32.mrb[11].mxu1 }
 0x1df   : > { %1228 = vst.msk [vmem:[%s1927_s10 + $0x40] sm:$0xff] %vm1219_vm2, %v997_v37  ;;  %v1000_v41 = vadd.f32 %v1920_v18, %v999_v40 }
 0x1e0   : > { %1231 = vst.msk [vmem:[%s1927_s10 + $0x58] sm:$0xff] %vm1219_vm2, %v1008_v39 }
 0x1e1   : > { %1229 = vst.msk [vmem:[%s1927_s10 + $0x48] sm:$0xff] %vm1219_vm2, %v1000_v41 }
 0x1e3   : > { %v1585_v42 = vpop.f32.mrb[12].mxu1 }
 0x1e4   : > { %v1021_v43 = vadd.f32 %v1585_v42, %v1920_v18  ;;  %v1012_v44 = vpop.f32.mrb[13].mxu1 }
 0x1e5   : > { %v1013_v45 = vadd.f32 %v1920_v18, %v1012_v44  ;;  %v1586_v47 = vpop.f32.mrb[14].mxu1 }
 0x1e6   : > { %1234 = vst.msk [vmem:[%s1927_s10 + $0x70] sm:$0xff] %vm1219_vm2, %v1021_v43  ;;  %v1024_v48 = vadd.f32 %v1586_v47, %v1920_v18  ;;  %v1015_v49 = vpop.f32.mrb[15].mxu1 }
 0x1e7   : > { %1232 = vst.msk [vmem:[%s1927_s10 + $0x60] sm:$0xff] %vm1219_vm2, %v1013_v45  ;;  %v1016_v50 = vadd.f32 %v1920_v18, %v1015_v49 }
 0x1e8   : > { %1235 = vst.msk [vmem:[%s1927_s10 + $0x78] sm:$0xff] %vm1219_vm2, %v1024_v48 }
 0x1e9   : > { %1233 = vst.msk [vmem:[%s1927_s10 + $0x68] sm:$0xff] %vm1219_vm2, %v1016_v50 }
 0x1eb   : > { %v1589_v51 = vpop.f32.mrb[16].mxu1 }
 0x1ec   : > { %v1037_v52 = vadd.f32 %v1589_v51, %v1920_v18  ;;  %v1028_v53 = vpop.f32.mrb[17].mxu1 }
 0x1ed   : > { %v1029_v54 = vadd.f32 %v1920_v18, %v1028_v53  ;;  %v1590_v55 = vpop.f32.mrb[18].mxu1 }
 0x1ee   : > { %1238 = vst.msk [vmem:[%s1927_s10 + $0x90] sm:$0xff] %vm1219_vm2, %v1037_v52  ;;  %v1040_v56 = vadd.f32 %v1590_v55, %v1920_v18  ;;  %v1031_v57 = vpop.f32.mrb[19].mxu1 }
 0x1ef   : > { %1236 = vst.msk [vmem:[%s1927_s10 + $0x80] sm:$0xff] %vm1219_vm2, %v1029_v54  ;;  %v1032_v58 = vadd.f32 %v1920_v18, %v1031_v57 }
 0x1f0   : > { %1239 = vst.msk [vmem:[%s1927_s10 + $0x98] sm:$0xff] %vm1219_vm2, %v1040_v56 }
 0x1f1   : > { %1237 = vst.msk [vmem:[%s1927_s10 + $0x88] sm:$0xff] %vm1219_vm2, %v1032_v58 }
 0x1f3   : > { %v1593_v59 = vpop.f32.mrb[20].mxu1 }
 0x1f4   : > { %v1053_v60 = vadd.f32 %v1593_v59, %v1920_v18  ;;  %v1044_v61 = vpop.f32.mrb[21].mxu1 }
 0x1f5   : > { %v1045_v62 = vadd.f32 %v1920_v18, %v1044_v61  ;;  %v1594_v63 = vpop.f32.mrb[22].mxu1 }
 0x1f6   : > { %1242 = vst.msk [vmem:[%s1927_s10 + $0xb0] sm:$0xff] %vm1219_vm2, %v1053_v60  ;;  %v1056_v0 = vadd.f32 %v1594_v63, %v1920_v18  ;;  %v1047_v1 = vpop.f32.mrb[23].mxu1 }
 0x1f7   : > { %1240 = vst.msk [vmem:[%s1927_s10 + $0xa0] sm:$0xff] %vm1219_vm2, %v1045_v62  ;;  %v1048_v2 = vadd.f32 %v1920_v18, %v1047_v1 }
 0x1f8   : > { %1243 = vst.msk [vmem:[%s1927_s10 + $0xb8] sm:$0xff] %vm1219_vm2, %v1056_v0 }
 0x1f9   : > { %1241 = vst.msk [vmem:[%s1927_s10 + $0xa8] sm:$0xff] %vm1219_vm2, %v1048_v2 }
 0x1fb   : > { %v1597_v3 = vpop.f32.mrb[24].mxu1 }
 0x1fc   : > { %v1069_v4 = vadd.f32 %v1597_v3, %v1920_v18  ;;  %v1060_v5 = vpop.f32.mrb[25].mxu1 }
 0x1fd   : > { %v1061_v6 = vadd.f32 %v1920_v18, %v1060_v5  ;;  %v1598_v7 = vpop.f32.mrb[26].mxu1 }
 0x1fe   : > { %1246 = vst.msk [vmem:[%s1927_s10 + $0xd0] sm:$0xff] %vm1219_vm2, %v1069_v4  ;;  %v1072_v8 = vadd.f32 %v1598_v7, %v1920_v18  ;;  %v1063_v9 = vpop.f32.mrb[27].mxu1 }
 0x1ff   : > { %1244 = vst.msk [vmem:[%s1927_s10 + $0xc0] sm:$0xff] %vm1219_vm2, %v1061_v6  ;;  %v1064_v10 = vadd.f32 %v1920_v18, %v1063_v9 }
 0x200   : > { %1247 = vst.msk [vmem:[%s1927_s10 + $0xd8] sm:$0xff] %vm1219_vm2, %v1072_v8 }
 0x201   : > { %1245 = vst.msk [vmem:[%s1927_s10 + $0xc8] sm:$0xff] %vm1219_vm2, %v1064_v10 }
 0x203   : > { %v1601_v11 = vpop.f32.mrb[28].mxu1 }
 0x204   : > { %v1085_v12 = vadd.f32 %v1601_v11, %v1920_v18  ;;  %v1076_v13 = vpop.f32.mrb[29].mxu1 }
 0x205   : > { %v1077_v14 = vadd.f32 %v1920_v18, %v1076_v13  ;;  %v1602_v15 = vpop.f32.mrb[30].mxu1 }
 0x206   : > { %1250 = vst.msk [vmem:[%s1927_s10 + $0xf0] sm:$0xff] %vm1219_vm2, %v1085_v12  ;;  %v1088_v16 = vadd.f32 %v1602_v15, %v1920_v18  ;;  %v1079_v17 = vpop.f32.mrb[31].mxu1 }
 0x207   : > { %1248 = vst.msk [vmem:[%s1927_s10 + $0xe0] sm:$0xff] %vm1219_vm2, %v1077_v14  ;;  %v1080_v46 = vadd.f32 %v1920_v18, %v1079_v17 }
 0x208   : > { %1251 = vst.msk [vmem:[%s1927_s10 + $0xf8] sm:$0xff] %vm1219_vm2, %v1088_v16 }
 0x209   : > { %1249 = vst.msk [vmem:[%s1927_s10 + $0xe8] sm:$0xff] %vm1219_vm2, %v1080_v46 }
 0x20b   : > { %v1605_v19 = vpop.f32.mrb[32].mxu1 }
 0x20c   : > { %v1101_v20 = vadd.f32 %v1605_v19, %v1920_v18  ;;  %v1092_v21 = vpop.f32.mrb[33].mxu1 }
 0x20d   : > { %v1093_v22 = vadd.f32 %v1920_v18, %v1092_v21  ;;  %v1606_v23 = vpop.f32.mrb[34].mxu1 }
 0x20e   : > { %1254 = vst.msk [vmem:[%s1927_s10 + $0x110] sm:$0xff] %vm1219_vm2, %v1101_v20  ;;  %v1104_v24 = vadd.f32 %v1606_v23, %v1920_v18  ;;  %v1095_v25 = vpop.f32.mrb[35].mxu1 }
 0x20f   : > { %1252 = vst.msk [vmem:[%s1927_s10 + $0x100] sm:$0xff] %vm1219_vm2, %v1093_v22  ;;  %v1096_v26 = vadd.f32 %v1920_v18, %v1095_v25 }
 0x210   : > { %1255 = vst.msk [vmem:[%s1927_s10 + $0x118] sm:$0xff] %vm1219_vm2, %v1104_v24 }
 0x211   : > { %1253 = vst.msk [vmem:[%s1927_s10 + $0x108] sm:$0xff] %vm1219_vm2, %v1096_v26 }
 0x213   : > { %v1609_v27 = vpop.f32.mrb[36].mxu1 }
 0x214   : > { %v1117_v28 = vadd.f32 %v1609_v27, %v1920_v18  ;;  %v1108_v29 = vpop.f32.mrb[37].mxu1 }
 0x215   : > { %v1109_v30 = vadd.f32 %v1920_v18, %v1108_v29  ;;  %v1610_v31 = vpop.f32.mrb[38].mxu1 }
 0x216   : > { %1258 = vst.msk [vmem:[%s1927_s10 + $0x130] sm:$0xff] %vm1219_vm2, %v1117_v28  ;;  %v1120_v32 = vadd.f32 %v1610_v31, %v1920_v18  ;;  %v1111_v33 = vpop.f32.mrb[39].mxu1 }
 0x217   : > { %1256 = vst.msk [vmem:[%s1927_s10 + $0x120] sm:$0xff] %vm1219_vm2, %v1109_v30  ;;  %v1112_v34 = vadd.f32 %v1920_v18, %v1111_v33 }
 0x218   : > { %1259 = vst.msk [vmem:[%s1927_s10 + $0x138] sm:$0xff] %vm1219_vm2, %v1120_v32 }
 0x219   : > { %1257 = vst.msk [vmem:[%s1927_s10 + $0x128] sm:$0xff] %vm1219_vm2, %v1112_v34 }
 0x21b   : > { %v1613_v35 = vpop.f32.mrb[40].mxu1 }
 0x21c   : > { %v1133_v36 = vadd.f32 %v1613_v35, %v1920_v18  ;;  %v1124_v37 = vpop.f32.mrb[41].mxu1 }
 0x21d   : > { %v1125_v38 = vadd.f32 %v1920_v18, %v1124_v37  ;;  %v1614_v39 = vpop.f32.mrb[42].mxu1 }
 0x21e   : > { %1262 = vst.msk [vmem:[%s1927_s10 + $0x150] sm:$0xff] %vm1219_vm2, %v1133_v36  ;;  %v1136_v40 = vadd.f32 %v1614_v39, %v1920_v18  ;;  %v1127_v41 = vpop.f32.mrb[43].mxu1 }
 0x21f   : > { %1260 = vst.msk [vmem:[%s1927_s10 + $0x140] sm:$0xff] %vm1219_vm2, %v1125_v38  ;;  %v1128_v42 = vadd.f32 %v1920_v18, %v1127_v41 }
 0x220   : > { %1263 = vst.msk [vmem:[%s1927_s10 + $0x158] sm:$0xff] %vm1219_vm2, %v1136_v40 }
 0x221   : > { %1261 = vst.msk [vmem:[%s1927_s10 + $0x148] sm:$0xff] %vm1219_vm2, %v1128_v42 }
 0x223   : > { %v1617_v43 = vpop.f32.mrb[44].mxu1 }
 0x224   : > { %v1149_v44 = vadd.f32 %v1617_v43, %v1920_v18  ;;  %v1140_v45 = vpop.f32.mrb[45].mxu1 }
 0x225   : > { %v1141_v47 = vadd.f32 %v1920_v18, %v1140_v45  ;;  %v1618_v48 = vpop.f32.mrb[46].mxu1 }
 0x226   : > { %1266 = vst.msk [vmem:[%s1927_s10 + $0x170] sm:$0xff] %vm1219_vm2, %v1149_v44  ;;  %v1152_v49 = vadd.f32 %v1618_v48, %v1920_v18  ;;  %v1143_v50 = vpop.f32.mrb[47].mxu1 }
 0x227   : > { %1264 = vst.msk [vmem:[%s1927_s10 + $0x160] sm:$0xff] %vm1219_vm2, %v1141_v47  ;;  %v1144_v51 = vadd.f32 %v1920_v18, %v1143_v50 }
 0x228   : > { %1267 = vst.msk [vmem:[%s1927_s10 + $0x178] sm:$0xff] %vm1219_vm2, %v1152_v49 }
 0x229   : > { %1265 = vst.msk [vmem:[%s1927_s10 + $0x168] sm:$0xff] %vm1219_vm2, %v1144_v51 }
 0x22b   : > { %v1621_v52 = vpop.f32.mrb[48].mxu1 }
 0x22c   : > { %v1165_v53 = vadd.f32 %v1621_v52, %v1920_v18  ;;  %v1156_v54 = vpop.f32.mrb[49].mxu1 }
 0x22d   : > { %v1157_v55 = vadd.f32 %v1920_v18, %v1156_v54  ;;  %v1622_v56 = vpop.f32.mrb[50].mxu1 }
 0x22e   : > { %1270 = vst.msk [vmem:[%s1927_s10 + $0x190] sm:$0xff] %vm1219_vm2, %v1165_v53  ;;  %v1168_v57 = vadd.f32 %v1622_v56, %v1920_v18  ;;  %v1159_v58 = vpop.f32.mrb[51].mxu1 }
 0x22f   : > { %1268 = vst.msk [vmem:[%s1927_s10 + $0x180] sm:$0xff] %vm1219_vm2, %v1157_v55  ;;  %v1160_v59 = vadd.f32 %v1920_v18, %v1159_v58 }
 0x230   : > { %1271 = vst.msk [vmem:[%s1927_s10 + $0x198] sm:$0xff] %vm1219_vm2, %v1168_v57 }
 0x231   : > { %1269 = vst.msk [vmem:[%s1927_s10 + $0x188] sm:$0xff] %vm1219_vm2, %v1160_v59 }
 0x233   : > { %v1625_v60 = vpop.f32.mrb[52].mxu1 }
 0x234   : > { %v1181_v61 = vadd.f32 %v1625_v60, %v1920_v18  ;;  %v1172_v62 = vpop.f32.mrb[53].mxu1 }
 0x235   : > { %v1173_v63 = vadd.f32 %v1920_v18, %v1172_v62  ;;  %v1626_v0 = vpop.f32.mrb[54].mxu1 }
 0x236   : > { %1274 = vst.msk [vmem:[%s1927_s10 + $0x1b0] sm:$0xff] %vm1219_vm2, %v1181_v61  ;;  %v1184_v1 = vadd.f32 %v1626_v0, %v1920_v18  ;;  %v1175_v2 = vpop.f32.mrb[55].mxu1 }
 0x237   : > { %1272 = vst.msk [vmem:[%s1927_s10 + $0x1a0] sm:$0xff] %vm1219_vm2, %v1173_v63  ;;  %v1176_v3 = vadd.f32 %v1920_v18, %v1175_v2 }
 0x238   : > { %1275 = vst.msk [vmem:[%s1927_s10 + $0x1b8] sm:$0xff] %vm1219_vm2, %v1184_v1 }
 0x239   : > { %1273 = vst.msk [vmem:[%s1927_s10 + $0x1a8] sm:$0xff] %vm1219_vm2, %v1176_v3 }
 0x23b   : > { %v1629_v4 = vpop.f32.mrb[56].mxu1 }
 0x23c   : > { %v1197_v5 = vadd.f32 %v1629_v4, %v1920_v18  ;;  %v1188_v6 = vpop.f32.mrb[57].mxu1 }
 0x23d   : > { %v1189_v7 = vadd.f32 %v1920_v18, %v1188_v6  ;;  %v1630_v8 = vpop.f32.mrb[58].mxu1 }
 0x23e   : > { %1278 = vst.msk [vmem:[%s1927_s10 + $0x1d0] sm:$0xff] %vm1219_vm2, %v1197_v5  ;;  %v1200_v9 = vadd.f32 %v1630_v8, %v1920_v18  ;;  %v1191_v10 = vpop.f32.mrb[59].mxu1 }
 0x23f   : > { %1276 = vst.msk [vmem:[%s1927_s10 + $0x1c0] sm:$0xff] %vm1219_vm2, %v1189_v7  ;;  %v1192_v11 = vadd.f32 %v1920_v18, %v1191_v10 }
 0x240   : > { %1279 = vst.msk [vmem:[%s1927_s10 + $0x1d8] sm:$0xff] %vm1219_vm2, %v1200_v9 }
 0x241   : > { %1277 = vst.msk [vmem:[%s1927_s10 + $0x1c8] sm:$0xff] %vm1219_vm2, %v1192_v11 }
 0x243   : > { %v1633_v12 = vpop.f32.mrb[60].mxu1 }
 0x244   : > { %v1213_v13 = vadd.f32 %v1633_v12, %v1920_v18  ;;  %v1204_v14 = vpop.f32.mrb[61].mxu1 }
 0x245   : > { %v1205_v15 = vadd.f32 %v1920_v18, %v1204_v14  ;;  %v1634_v16 = vpop.f32.mrb[62].mxu1 }
 0x246   : > { %1282 = vst.msk [vmem:[%s1927_s10 + $0x1f0] sm:$0xff] %vm1219_vm2, %v1213_v13  ;;  %v1216_v17 = vadd.f32 %v1634_v16, %v1920_v18  ;;  %v1207_v46 = vpop.f32.mrb[63].mxu1 }
 0x247   : > { %1280 = vst.msk [vmem:[%s1927_s10 + $0x1e0] sm:$0xff] %vm1219_vm2, %v1205_v15  ;;  %v1208_v19 = vadd.f32 %v1920_v18, %v1207_v46 }
 0x248   : > { %1283 = vst.msk [vmem:[%s1927_s10 + $0x1f8] sm:$0xff] %vm1219_vm2, %v1216_v17 }
 0x249   : > { %1281 = vst.msk [vmem:[%s1927_s10 + $0x1e8] sm:$0xff] %vm1219_vm2, %v1208_v19 }
 0x24a PF: > { %s15_s18 = sadd.s32 1, %s1663_s18  }
 0x24b   : > { %p12_p4 = scmp.ge.s32.totalorder %s15_s18, 4  }
 0x24d   :  { %14 = sbr.rel (!%p12_p4) target bundleno = 1 (0x1), region = 70 }

// kernel: posenet_forward.3
= control target key start
LH: loop header
LB: loop body
LE: loop exit
PB: predicated region body
PF: predicated region fallthrough
CT: control target
= control target key end

     0   :  { %s4658_s12 = smov 0   ;;  %s4660_s13 = smov 0   ;;  %s5185_s0 = inlined_call_operand.vmem [shape: f32[2,3840], index: 0, kind: input, shape index: {}]   ;;  %s5186_s1 = inlined_call_operand.vmem [shape: bf16[3840,384], index: 1, kind: input, shape index: {}]   ;;  %s5187_s2 = inlined_call_operand.vmem [shape: f32[1,384], index: 2, kind: input, shape index: {}]   ;;  %s5188_s3 = inlined_call_operand.vmem [shape: f32[2,384], index: 3, kind: output, shape index: {}]  }
   0x1   :  { %s4662_s14 = smov 0  }
   0x2 LB: > { %s22_s15 = sadd.s32 1, %s4627_s13  ;;  %p3519_p0 = scmp.ge.s32.totalorder %s4631_s14, 1  ;;  %s4631_s14 = sphi %s4662_s14, %s13_s14   ;;  %s4627_s13 = sphi %s4660_s13, %s5190_s13   ;;  %s4623_s12 = sphi %s4658_s12, %s5189_s12  }
   0x3   : > { %p23_p1 = scmp.ge.s32.totalorder %s22_s15, 2  ;;  %p168_p2 = scmp.lt.s32.totalorder %s4631_s14, 3 }
   0x5   : > { %s5192_s15 = smov (%p23_p1, %s22_s15), 0  ;;  %p169_p3 = pnand %p3519_p0, %p168_p2 }
   0x6   : > { %s202_s16 = smul.u32 (!%p169_p3), 15, %s4623_s12  ;;  %p3522_p6 = scmp.ne.s32.totalorder (!%p169_p3), %s4623_s12, 0 }
   0x7   : > { %172 = sbr.rel (%p169_p3) target bundleno = 636 (0x27c), region = 32 }
   0x8   : > { %s212_s17 = smul.u32 (!%p169_p3), 240, %s4623_s12  ;;  %p205_p4 = scmp.lt.s32.totalorder (!%p169_p3), %s202_s16, 29 }
   0xa   : > { %p213_p5 = scmp.lt.s32.totalorder (!%p169_p3), %s212_s17, 479 }
   0xe   : > { %s5194_s16 = smov (!%p205_p4, %s202_s16), 29  ;;  %s5196_s17 = smov (!%p213_p5, %s212_s17), 479 }
   0xf   : > { %s3520_s18 = sshll.u32 %s5194_s16, 1  ;;  %s4095_s22 = smul.u32 12, %s5196_s17  ;;  %v231_v0 = vlaneseq (!%p3522_p6)  ;;  %v4633_v1 = vmov (!%p3522_p6), 1983009808   ;;  %v229_v4 = vld [vmem:[%s5187_s2] sm:$0x7] (!%p3522_p6) }
  0x10   : > { %s4679_s21 = scalar_lea.vmem %s5185_s0, %s3520_s18  ;;  %228 = sbr.rel (%p3522_p6) target bundleno = 30 (0x1e), region = 36  ;;  %v245_v2 = vunpack.c.l.s4 (!%p3522_p6), %v4633_v1 }
  0x11   : > { %s4684_s25 = scalar_lea.vmem %s5186_s1, %s4095_s22  ;;  %v232_v3 = vshrl.u32 (!%p3522_p6), %v231_v0, 7 }
  0x12   : > { %v246_v5 = vunpack.c.0.s8 (!%p3522_p6), %v245_v2 }
  0x13   : > { %v233_v6 = vsub.s32 (!%p3522_p6), 0, %v232_v3  ;;  %v237_v7 = vsub.s32 (!%p3522_p6), 1, %v232_v3  ;;  %v241_v8 = vsub.s32 (!%p3522_p6), 2, %v232_v3 }
  0x14   : > { %v249_v9 = vsub.s32 (!%p3522_p6), %v246_v5, %v232_v3 }
  0x15   : > { %v234_v10 = vrot.slane (!%p3522_p6), %v229_v4, %v233_v6  ;;  %v238_v11 = vrot.slane (!%p3522_p6), %v229_v4, %v237_v7  ;;  %v242_v12 = vrot.slane (!%p3522_p6), %v229_v4, %v241_v8 }
  0x17   : > { %v243_v13 = vcombine.low %v234_v10, %v238_v11  ;;  %v257_v14 = vrot.slane %v242_v12, %v249_v9 }
  0x19   : > { %v250_v15 = vrot.slane %v243_v13, %v249_v9 }
  0x1b   : > { %v258_v16 = vcombine.low %v250_v15, %v257_v14 }
  0x1d   : > { %260 = vst [vmem:[%s5188_s3] sm:$0x3f] %v258_v16 }
  0x1e PF: > { %v4125_v17 = vld [vmem:[%s4684_s25 + $0x4] ss:$12 sps:$4 sm:$0xff]   ;;  %v4129_v19 = vld [vmem:[%s4684_s25] ss:$12 sps:$4 sm:$0xff]   ;;  %v4131_v21 = vld [vmem:[%s4684_s25 + $0x1c] ss:$12 sps:$4 sm:$0xff]   ;;  %v274_v55 = vlaneseq }
  0x1f   : > { %v4127_v18 = vld [vmem:[%s4684_s25 + $0x304] ss:$12 sps:$4 sm:$0xff]   ;;  %2767 = vmatprep.subr.bf16.mxu1 %v4125_v17  ;;  %v4130_v20 = vld [vmem:[%s4684_s25 + $0x300] ss:$12 sps:$4 sm:$0xff]   ;;  %v4133_v22 = vld [vmem:[%s4684_s25 + $0x31c] ss:$12 sps:$4 sm:$0xff]  }
  0x20   : > { %2849 = vmatprep.subr.bf16.mxu0 %v4127_v18  ;;  %2768 = vmatpush1.bf16.msra.mxu1 %v4129_v19  ;;  %v4135_v23 = vld [vmem:[%s4684_s25 + $0x18] ss:$12 sps:$4 sm:$0xff]   ;;  %v4137_v25 = vld [vmem:[%s4684_s25 + $0x34] ss:$12 sps:$4 sm:$0xff]   ;;  %v4141_v27 = vld [vmem:[%s4684_s25 + $0x30] ss:$12 sps:$4 sm:$0xff]  }
  0x21   : > { %2850 = vmatpush1.bf16.msra.mxu0 %v4130_v20  ;;  %2769 = vmatprep.subr.bf16.mxu1 %v4131_v21  ;;  %v4136_v24 = vld [vmem:[%s4684_s25 + $0x318] ss:$12 sps:$4 sm:$0xff]   ;;  %v4139_v26 = vld [vmem:[%s4684_s25 + $0x334] ss:$12 sps:$4 sm:$0xff]   ;;  %v4142_v28 = vld [vmem:[%s4684_s25 + $0x330] ss:$12 sps:$4 sm:$0xff]  }
  0x22   : > { %2851 = vmatprep.subr.bf16.mxu0 %v4133_v22  ;;  %v4143_v29 = vld [vmem:[%s4684_s25 + $0x4c] ss:$12 sps:$4 sm:$0xff]   ;;  %v4147_v31 = vld [vmem:[%s4684_s25 + $0x48] ss:$12 sps:$4 sm:$0xff]   ;;  %v4149_v33 = vld [vmem:[%s4684_s25 + $0x64] ss:$12 sps:$4 sm:$0xff]  }
  0x23   : > { %v4145_v30 = vld [vmem:[%s4684_s25 + $0x34c] ss:$12 sps:$4 sm:$0xff]   ;;  %v4148_v32 = vld [vmem:[%s4684_s25 + $0x348] ss:$12 sps:$4 sm:$0xff]   ;;  %v4151_v34 = vld [vmem:[%s4684_s25 + $0x364] ss:$12 sps:$4 sm:$0xff]  }
  0x24   : > { %2770 = vmatpush1.bf16.msra.mxu1 %v4135_v23  ;;  %v4153_v35 = vld [vmem:[%s4684_s25 + $0x60] ss:$12 sps:$4 sm:$0xff]   ;;  %v4155_v37 = vld [vmem:[%s4684_s25 + $0x7c] ss:$12 sps:$4 sm:$0xff]   ;;  %v4159_v39 = vld [vmem:[%s4684_s25 + $0x78] ss:$12 sps:$4 sm:$0xff]  }
  0x25   : > { %2852 = vmatpush1.bf16.msra.mxu0 %v4136_v24  ;;  %2771 = vmatprep.subr.bf16.mxu1 %v4137_v25  ;;  %v4154_v36 = vld [vmem:[%s4684_s25 + $0x360] ss:$12 sps:$4 sm:$0xff]   ;;  %v4157_v38 = vld [vmem:[%s4684_s25 + $0x37c] ss:$12 sps:$4 sm:$0xff]   ;;  %v4160_v40 = vld [vmem:[%s4684_s25 + $0x378] ss:$12 sps:$4 sm:$0xff]  }
  0x26   : > { %2853 = vmatprep.subr.bf16.mxu0 %v4139_v26  ;;  %v4161_v41 = vld [vmem:[%s4684_s25 + $0x94] ss:$12 sps:$4 sm:$0xff]   ;;  %v4165_v43 = vld [vmem:[%s4684_s25 + $0x90] ss:$12 sps:$4 sm:$0xff]   ;;  %v4167_v45 = vld [vmem:[%s4684_s25 + $0xac] ss:$12 sps:$4 sm:$0xff]  }
  0x27   : > { %v4163_v42 = vld [vmem:[%s4684_s25 + $0x394] ss:$12 sps:$4 sm:$0xff]   ;;  %v4166_v44 = vld [vmem:[%s4684_s25 + $0x390] ss:$12 sps:$4 sm:$0xff]   ;;  %v4169_v46 = vld [vmem:[%s4684_s25 + $0x3ac] ss:$12 sps:$4 sm:$0xff]  }
  0x28   : > { %2772 = vmatpush1.bf16.msra.mxu1 %v4141_v27  ;;  %v4171_v47 = vld [vmem:[%s4684_s25 + $0xa8] ss:$12 sps:$4 sm:$0xff]   ;;  %v4173_v49 = vld [vmem:[%s4684_s25 + $0xc4] ss:$12 sps:$4 sm:$0xff]   ;;  %v4177_v51 = vld [vmem:[%s4684_s25 + $0xc0] ss:$12 sps:$4 sm:$0xff]  }
  0x29   : > { %2854 = vmatpush1.bf16.msra.mxu0 %v4142_v28  ;;  %2773 = vmatprep.subr.bf16.mxu1 %v4143_v29  ;;  %v4172_v48 = vld [vmem:[%s4684_s25 + $0x3a8] ss:$12 sps:$4 sm:$0xff]   ;;  %v4175_v50 = vld [vmem:[%s4684_s25 + $0x3c4] ss:$12 sps:$4 sm:$0xff]   ;;  %v4178_v52 = vld [vmem:[%s4684_s25 + $0x3c0] ss:$12 sps:$4 sm:$0xff]  }
  0x2a   : > { %2855 = vmatprep.subr.bf16.mxu0 %v4145_v30  ;;  %v4634_v53 = vmov 1983009808   ;;  %v4179_v56 = vld [vmem:[%s4684_s25 + $0xdc] ss:$12 sps:$4 sm:$0xff]   ;;  %v4183_v58 = vld [vmem:[%s4684_s25 + $0xd8] ss:$12 sps:$4 sm:$0xff]  }
  0x2b   : > { %v272_v54 = vunpack.c.l.s4 %v4634_v53  ;;  %v4181_v57 = vld [vmem:[%s4684_s25 + $0x3dc] ss:$12 sps:$4 sm:$0xff]   ;;  %v275_v60 = vshrl.u32 %v274_v55, 7  ;;  %v4184_v61 = vld [vmem:[%s4684_s25 + $0x3d8] ss:$12 sps:$4 sm:$0xff]   ;;  %vm4637_vm0 = vmmov 0  }
  0x2c   : > { %2774 = vmatpush1.bf16.msra.mxu1 %v4147_v31  ;;  %v4185_v62 = vld [vmem:[%s4684_s25 + $0xf4] ss:$12 sps:$4 sm:$0xff]   ;;  %v4189_v0 = vld [vmem:[%s4684_s25 + $0xf0] ss:$12 sps:$4 sm:$0xff]   ;;  %v4191_v3 = vld [vmem:[%s4684_s25 + $0x10c] ss:$12 sps:$4 sm:$0xff]  }
  0x2d   : > { %2856 = vmatpush1.bf16.msra.mxu0 %v4148_v32  ;;  %2775 = vmatprep.subr.bf16.mxu1 %v4149_v33  ;;  %v273_v59 = vunpack.c.0.s8 %v272_v54  ;;  %v4187_v63 = vld [vmem:[%s4684_s25 + $0x3f4] ss:$12 sps:$4 sm:$0xff]   ;;  %v4190_v1 = vld [vmem:[%s4684_s25 + $0x3f0] ss:$12 sps:$4 sm:$0xff]   ;;  %v4193_v4 = vld [vmem:[%s4684_s25 + $0x40c] ss:$12 sps:$4 sm:$0xff]  }
  0x2e   : > { %2857 = vmatprep.subr.bf16.mxu0 %v4151_v34  ;;  %v262_v5 = vld [vmem:[%s4679_s21] sm:$0xff]  ;;  %v4195_v6 = vld [vmem:[%s4684_s25 + $0x108] ss:$12 sps:$4 sm:$0xff]   ;;  %v4213_v27 = vld [vmem:[%s4684_s25 + $0x150] ss:$12 sps:$4 sm:$0xff]  }
  0x2f   : > { %v4736_v2 = vsub.s32 %v273_v59, %v275_v60  ;;  %v4196_v8 = vld [vmem:[%s4684_s25 + $0x408] ss:$12 sps:$4 sm:$0xff]   ;;  %v4197_v10 = vld [vmem:[%s4684_s25 + $0x124] ss:$12 sps:$4 sm:$0xff]   ;;  %v4201_v16 = vld [vmem:[%s4684_s25 + $0x120] ss:$12 sps:$4 sm:$0xff]   ;;  %v270_v25 = vcombine.high %v262_v5, %v262_v5 }
  0x30   : > { %2776 = vmatpush1.bf16.msra.mxu1 %v4153_v35  ;;  %v263_v9 = vld [vmem:[%s4679_s21 + $0x8] sm:$0xff]  ;;  %v4199_v11 = vld [vmem:[%s4684_s25 + $0x424] ss:$12 sps:$4 sm:$0xff]   ;;  %v4209_v23 = vld [vmem:[%s4684_s25 + $0x154] ss:$12 sps:$4 sm:$0xff]  }
  0x31   : > { %2858 = vmatpush1.bf16.msra.mxu0 %v4154_v36  ;;  %2777 = vmatprep.subr.bf16.mxu1 %v4155_v37  ;;  %v277_v7 = vrot.slane %v262_v5, %v4736_v2  ;;  %v294_v13 = vrot.slane %v263_v9, %v4736_v2  ;;  %v4202_v17 = vld [vmem:[%s4684_s25 + $0x420] ss:$12 sps:$4 sm:$0xff]   ;;  %v4203_v18 = vld [vmem:[%s4684_s25 + $0x13c] ss:$12 sps:$4 sm:$0xff]   ;;  %v4207_v21 = vld [vmem:[%s4684_s25 + $0x138] ss:$12 sps:$4 sm:$0xff]   ;;  %v287_v26 = vcombine.high %v263_v9, %v263_v9 }
  0x32   : > { %2859 = vmatprep.subr.bf16.mxu0 %v4157_v38  ;;  %v4205_v19 = vld [vmem:[%s4684_s25 + $0x43c] ss:$12 sps:$4 sm:$0xff]   ;;  %v4208_v22 = vld [vmem:[%s4684_s25 + $0x438] ss:$12 sps:$4 sm:$0xff]   ;;  %v4211_v24 = vld [vmem:[%s4684_s25 + $0x454] ss:$12 sps:$4 sm:$0xff]   ;;  %v4767_v31 = vrot.slane %v270_v25, %v4736_v2 }
  0x33   : > { %v285_v12 = vcombine.high %v277_v7, %v277_v7  ;;  %v302_v15 = vcombine.high %v294_v13, %v294_v13  ;;  %v4214_v28 = vld [vmem:[%s4684_s25 + $0x450] ss:$12 sps:$4 sm:$0xff]   ;;  %v4215_v29 = vld [vmem:[%s4684_s25 + $0x16c] ss:$12 sps:$4 sm:$0xff]   ;;  %v4770_v32 = vrot.slane %v287_v26, %v4736_v2  ;;  %v4219_v33 = vld [vmem:[%s4684_s25 + $0x168] ss:$12 sps:$4 sm:$0xff]  }
  0x34   : > { %2778 = vmatpush1.bf16.msra.mxu1 %v4159_v39  ;;  %v4217_v30 = vld [vmem:[%s4684_s25 + $0x46c] ss:$12 sps:$4 sm:$0xff]   ;;  %v4220_v34 = vld [vmem:[%s4684_s25 + $0x468] ss:$12 sps:$4 sm:$0xff]   ;;  %v4224_v35 = vld [vmem:[%s4684_s25 + $0x184] ss:$12 sps:$4 sm:$0xff]   ;;  %v286_v37 = vcombine.high %v4767_v31, %v4767_v31  ;;  %v4780_v39 = vpack.c.bf16 %v277_v7, %v277_v7 }
  0x35   : > { %2860 = vmatpush1.bf16.msra.mxu0 %v4160_v40  ;;  %2779 = vmatprep.subr.bf16.mxu1 %v4161_v41  ;;  %v4748_v14 = vpack.c.bf16 %v285_v12, %v285_v12  ;;  %v4754_v20 = vpack.c.bf16 %v302_v15, %v302_v15  ;;  %v4228_v36 = vld [vmem:[%s4684_s25 + $0x484] ss:$12 sps:$4 sm:$0xff]   ;;  %v303_v38 = vcombine.high %v4770_v32, %v4770_v32  ;;  %v4222_v41 = vld [vmem:[%s4684_s25 + $0x180] ss:$12 sps:$4 sm:$0xff]   ;;  %v4241_v55 = vld [vmem:[%s4684_s25 + $0x1c8] ss:$12 sps:$4 sm:$0xff]  }
  0x36   : > { %2861 = vmatprep.subr.bf16.mxu0 %v4163_v42  ;;  %v4782_v40 = vpack.c.bf16 %v294_v13, %v294_v13  ;;  %v4226_v42 = vld [vmem:[%s4684_s25 + $0x480] ss:$12 sps:$4 sm:$0xff]   ;;  %v4262_v5 = vld [vmem:[%s4684_s25 + $0x510] ss:$12 sps:$4 sm:$0xff]   ;;  %v4268_v9 = vld [vmem:[%s4684_s25 + $0x528] ss:$12 sps:$4 sm:$0xff]  }
  0x37   : > { %2799 = vmatprep.mubr.bf16.mxu1 %v4748_v14  ;;  %2881 = vmatprep.mubr.bf16.mxu0 %v4754_v20  ;;  %v4243_v53 = vld [vmem:[%s4684_s25 + $0x1cc] ss:$12 sps:$4 sm:$0xff]   ;;  %v4279_v15 = vld [vmem:[%s4684_s25 + $0x25c] ss:$12 sps:$4 sm:$0xff]  }
  0x38   : > { %2780 = vmatpush1.bf16.msra.mxu1 %v4165_v43  ;;  %v4231_v43 = vld [vmem:[%s4684_s25 + $0x19c] ss:$12 sps:$4 sm:$0xff]   ;;  %v4246_v54 = vld [vmem:[%s4684_s25 + $0x4cc] ss:$12 sps:$4 sm:$0xff]  }
  0x39   : > { %2862 = vmatpush1.bf16.msra.mxu0 %v4166_v44  ;;  %2781 = vmatprep.subr.bf16.mxu1 %v4167_v45  ;;  %v4234_v44 = vld [vmem:[%s4684_s25 + $0x49c] ss:$12 sps:$4 sm:$0xff]   ;;  %v4788_v45 = vpack.c.bf16 %v286_v37, %v286_v37  ;;  %v4247_v59 = vld [vmem:[%s4684_s25 + $0x1e0] ss:$12 sps:$4 sm:$0xff]   ;;  %v4304_v37 = vld [vmem:[%s4684_s25 + $0x5b8] ss:$12 sps:$4 sm:$0xff]  }
  0x3a   : > { %2863 = vmatprep.subr.bf16.mxu0 %v4169_v46  ;;  %v4790_v46 = vpack.c.bf16 %v303_v38, %v303_v38  ;;  %v4250_v60 = vld [vmem:[%s4684_s25 + $0x4e0] ss:$12 sps:$4 sm:$0xff]   ;;  %v4289_v26 = vld [vmem:[%s4684_s25 + $0x288] ss:$12 sps:$4 sm:$0xff]  }
  0x3b   : > { %v4270_v7 = vld [vmem:[%s4684_s25 + $0x52c] ss:$12 sps:$4 sm:$0xff]   ;;  %v4309_v38 = vld [vmem:[%s4684_s25 + $0x2d4] ss:$12 sps:$4 sm:$0xff]  }
  0x3c   : > { %2782 = vmatpush1.bf16.msra.mxu1 %v4171_v47  ;;  %v4229_v47 = vld [vmem:[%s4684_s25 + $0x198] ss:$12 sps:$4 sm:$0xff]   ;;  %v4271_v12 = vld [vmem:[%s4684_s25 + $0x240] ss:$12 sps:$4 sm:$0xff]  }
  0x3d   : > { %2864 = vmatpush1.bf16.msra.mxu0 %v4172_v48  ;;  %2783 = vmatprep.subr.bf16.mxu1 %v4173_v49  ;;  %v4232_v48 = vld [vmem:[%s4684_s25 + $0x498] ss:$12 sps:$4 sm:$0xff]   ;;  %v4237_v49 = vld [vmem:[%s4684_s25 + $0x1b4] ss:$12 sps:$4 sm:$0xff]  }
  0x3e   : > { %2865 = vmatprep.subr.bf16.mxu0 %v4175_v50  ;;  %v4240_v50 = vld [vmem:[%s4684_s25 + $0x4b4] ss:$12 sps:$4 sm:$0xff]   ;;  %v4294_v25 = vld [vmem:[%s4684_s25 + $0x58c] ss:$12 sps:$4 sm:$0xff]  }
  0x3f   : > { %v4274_v13 = vld [vmem:[%s4684_s25 + $0x540] ss:$12 sps:$4 sm:$0xff]  }
  0x40   : > { %2784 = vmatpush1.bf16.msra.mxu1 %v4177_v51  ;;  %v4235_v51 = vld [vmem:[%s4684_s25 + $0x1b0] ss:$12 sps:$4 sm:$0xff]  }
  0x41   : > { %2866 = vmatpush1.bf16.msra.mxu0 %v4178_v52  ;;  %2785 = vmatprep.subr.bf16.mxu1 %v4179_v56  ;;  %v4238_v52 = vld [vmem:[%s4684_s25 + $0x4b0] ss:$12 sps:$4 sm:$0xff]   ;;  %v4244_v56 = vld [vmem:[%s4684_s25 + $0x4c8] ss:$12 sps:$4 sm:$0xff]  }
  0x42   : > { %2867 = vmatprep.subr.bf16.mxu0 %v4181_v57  ;;  %v4249_v57 = vld [vmem:[%s4684_s25 + $0x1e4] ss:$12 sps:$4 sm:$0xff]  }
  0x44   : > { %2786 = vmatpush1.bf16.msra.mxu1 %v4183_v58  ;;  %v4252_v58 = vld [vmem:[%s4684_s25 + $0x4e4] ss:$12 sps:$4 sm:$0xff]  }
  0x45   : > { %2868 = vmatpush1.bf16.msra.mxu0 %v4184_v61  ;;  %2787 = vmatprep.subr.bf16.mxu1 %v4185_v62  ;;  %v4255_v61 = vld [vmem:[%s4684_s25 + $0x1fc] ss:$12 sps:$4 sm:$0xff]  }
  0x46   : > { %2869 = vmatprep.subr.bf16.mxu0 %v4187_v63  ;;  %v4258_v62 = vld [vmem:[%s4684_s25 + $0x4fc] ss:$12 sps:$4 sm:$0xff]   ;;  %v4253_v63 = vld [vmem:[%s4684_s25 + $0x1f8] ss:$12 sps:$4 sm:$0xff]  }
  0x48   : > { %2788 = vmatpush1.bf16.msra.mxu1 %v4189_v0  ;;  %v4256_v0 = vld [vmem:[%s4684_s25 + $0x4f8] ss:$12 sps:$4 sm:$0xff]  }
  0x49   : > { %2870 = vmatpush1.bf16.msra.mxu0 %v4190_v1  ;;  %2789 = vmatprep.subr.bf16.mxu1 %v4191_v3  ;;  %v4261_v1 = vld [vmem:[%s4684_s25 + $0x214] ss:$12 sps:$4 sm:$0xff]  }
  0x4a   : > { %2871 = vmatprep.subr.bf16.mxu0 %v4193_v4  ;;  %v4264_v3 = vld [vmem:[%s4684_s25 + $0x514] ss:$12 sps:$4 sm:$0xff]   ;;  %v4259_v4 = vld [vmem:[%s4684_s25 + $0x210] ss:$12 sps:$4 sm:$0xff]  }
  0x4c   : > { %2790 = vmatpush1.bf16.msra.mxu1 %v4195_v6  ;;  %v4267_v6 = vld [vmem:[%s4684_s25 + $0x22c] ss:$12 sps:$4 sm:$0xff]  }
  0x4d   : > { %2872 = vmatpush1.bf16.msra.mxu0 %v4196_v8  ;;  %2791 = vmatprep.subr.bf16.mxu1 %v4197_v10  ;;  %v4265_v8 = vld [vmem:[%s4684_s25 + $0x228] ss:$12 sps:$4 sm:$0xff]   ;;  %v4273_v10 = vld [vmem:[%s4684_s25 + $0x244] ss:$12 sps:$4 sm:$0xff]  }
  0x4e   : > { %2873 = vmatprep.subr.bf16.mxu0 %v4199_v11  ;;  %v4276_v11 = vld [vmem:[%s4684_s25 + $0x544] ss:$12 sps:$4 sm:$0xff]  }
  0x50   : > { %2792 = vmatpush1.bf16.msra.mxu1 %v4201_v16  ;;  %v4282_v16 = vld [vmem:[%s4684_s25 + $0x55c] ss:$12 sps:$4 sm:$0xff]  }
  0x51   : > { %2874 = vmatpush1.bf16.msra.mxu0 %v4202_v17  ;;  %2793 = vmatprep.subr.bf16.mxu1 %v4203_v18  ;;  %v4277_v17 = vld [vmem:[%s4684_s25 + $0x258] ss:$12 sps:$4 sm:$0xff]  }
  0x52   : > { %2875 = vmatprep.subr.bf16.mxu0 %v4205_v19  ;;  %v4280_v18 = vld [vmem:[%s4684_s25 + $0x558] ss:$12 sps:$4 sm:$0xff]   ;;  %v4285_v19 = vld [vmem:[%s4684_s25 + $0x274] ss:$12 sps:$4 sm:$0xff]  }
  0x54   : > { %2794 = vmatpush1.bf16.msra.mxu1 %v4207_v21  ;;  %v4288_v21 = vld [vmem:[%s4684_s25 + $0x574] ss:$12 sps:$4 sm:$0xff]  }
  0x55   : > { %2876 = vmatpush1.bf16.msra.mxu0 %v4208_v22  ;;  %2795 = vmatprep.subr.bf16.mxu1 %v4209_v23  ;;  %v4283_v22 = vld [vmem:[%s4684_s25 + $0x270] ss:$12 sps:$4 sm:$0xff]  }
  0x56   : > { %2877 = vmatprep.subr.bf16.mxu0 %v4211_v24  ;;  %v4286_v23 = vld [vmem:[%s4684_s25 + $0x570] ss:$12 sps:$4 sm:$0xff]   ;;  %v4291_v24 = vld [vmem:[%s4684_s25 + $0x28c] ss:$12 sps:$4 sm:$0xff]  }
  0x58   : > { %2796 = vmatpush1.bf16.msra.mxu1 %v4213_v27  ;;  %v4292_v27 = vld [vmem:[%s4684_s25 + $0x588] ss:$12 sps:$4 sm:$0xff]  }
  0x59   : > { %2878 = vmatpush1.bf16.msra.mxu0 %v4214_v28  ;;  %2797 = vmatprep.subr.bf16.mxu1 %v4215_v29  ;;  %v4297_v28 = vld [vmem:[%s4684_s25 + $0x2a4] ss:$12 sps:$4 sm:$0xff]  }
  0x5a   : > { %2879 = vmatprep.subr.bf16.mxu0 %v4217_v30  ;;  %v4300_v29 = vld [vmem:[%s4684_s25 + $0x5a4] ss:$12 sps:$4 sm:$0xff]   ;;  %v4295_v30 = vld [vmem:[%s4684_s25 + $0x2a0] ss:$12 sps:$4 sm:$0xff]  }
  0x5c   : > { %2798 = vmatpush1.bf16.msra.mxu1 %v4219_v33  ;;  %v4298_v33 = vld [vmem:[%s4684_s25 + $0x5a0] ss:$12 sps:$4 sm:$0xff]  }
  0x5d   : > { %2880 = vmatpush1.bf16.msra.mxu0 %v4220_v34  ;;  %2808 = vmatprep.subr.bf16.mxu1 %v4224_v35  ;;  %v4303_v34 = vld [vmem:[%s4684_s25 + $0x2bc] ss:$12 sps:$4 sm:$0xff]  }
  0x5e   : > { %2890 = vmatprep.subr.bf16.mxu0 %v4228_v36  ;;  %v4306_v35 = vld [vmem:[%s4684_s25 + $0x5bc] ss:$12 sps:$4 sm:$0xff]   ;;  %v4301_v36 = vld [vmem:[%s4684_s25 + $0x2b8] ss:$12 sps:$4 sm:$0xff]  }
  0x5f   : > { %2800 = vmatmul.mubr.bf16.vlgmr.msra.gmra.mrb[0].mxu1 %v4780_v39 }
  0x60   : > { %2882 = vmatmul.mubr.bf16.vlgmr.msra.gmra.mrb[0].mxu0 %v4782_v40  ;;  %2809 = vmatpush1.bf16.msra.mxu1 %v4222_v41  ;;  %v4312_v41 = vld [vmem:[%s4684_s25 + $0x5d4] ss:$12 sps:$4 sm:$0xff]  }
  0x61   : > { %2891 = vmatpush1.bf16.msra.mxu0 %v4226_v42  ;;  %2810 = vmatprep.subr.bf16.mxu1 %v4231_v43  ;;  %v4307_v42 = vld [vmem:[%s4684_s25 + $0x2d0] ss:$12 sps:$4 sm:$0xff]  }
  0x62   : > { %2892 = vmatprep.subr.bf16.mxu0 %v4234_v44  ;;  %2840 = vmatprep.mubr.bf16.mxu1 %v4788_v45  ;;  %v4310_v43 = vld [vmem:[%s4684_s25 + $0x5d0] ss:$12 sps:$4 sm:$0xff]   ;;  %v4315_v44 = vld [vmem:[%s4684_s25 + $0x2ec] ss:$12 sps:$4 sm:$0xff]  }
  0x63   : > { %2922 = vmatprep.mubr.bf16.mxu0 %v4790_v46 }
  0x64   : > { %2811 = vmatpush1.bf16.msra.mxu1 %v4229_v47  ;;  %v4318_v47 = vld [vmem:[%s4684_s25 + $0x5ec] ss:$12 sps:$4 sm:$0xff]  }
  0x65   : > { %2893 = vmatpush1.bf16.msra.mxu0 %v4232_v48  ;;  %2812 = vmatprep.subr.bf16.mxu1 %v4237_v49  ;;  %v4313_v48 = vld [vmem:[%s4684_s25 + $0x2e8] ss:$12 sps:$4 sm:$0xff]  }
  0x66   : > { %2894 = vmatprep.subr.bf16.mxu0 %v4240_v50  ;;  %v4316_v49 = vld [vmem:[%s4684_s25 + $0x5e8] ss:$12 sps:$4 sm:$0xff]   ;;  %v4321_v50 = vld [vmem:[%s4684_s25 + $0x604] ss:$12 sps:$4 sm:$0xff]  }
  0x68   : > { %2813 = vmatpush1.bf16.msra.mxu1 %v4235_v51  ;;  %v4322_v51 = vld [vmem:[%s4684_s25 + $0xc8] ss:$12 sps:$4 sm:$0xff]  }
  0x69   : > { %2895 = vmatpush1.bf16.msra.mxu0 %v4238_v52  ;;  %2814 = vmatprep.subr.bf16.mxu1 %v4243_v53  ;;  %v4319_v52 = vld [vmem:[%s4684_s25 + $0x600] ss:$12 sps:$4 sm:$0xff]   ;;  %v4859_v53 = vpack.c.bf16 %v4767_v31, %v4767_v31  ;;  %v4324_v31 = vld [vmem:[%s4684_s25 + $0x618] ss:$12 sps:$4 sm:$0xff]  }
  0x6a   : > { %2896 = vmatprep.subr.bf16.mxu0 %v4246_v54  ;;  %v4863_v54 = vpack.c.bf16 %v4770_v32, %v4770_v32  ;;  %v4328_v32 = vld [vmem:[%s4684_s25 + $0x20] ss:$12 sps:$4 sm:$0xff]  }
  0x6c   : > { %2815 = vmatpush1.bf16.msra.mxu1 %v4241_v55  ;;  %v4323_v55 = vld [vmem:[%s4684_s25 + $0x8] ss:$12 sps:$4 sm:$0xff]  }
  0x6d   : > { %2897 = vmatpush1.bf16.msra.mxu0 %v4244_v56  ;;  %2816 = vmatprep.subr.bf16.mxu1 %v4249_v57  ;;  %v4326_v56 = vld [vmem:[%s4684_s25 + $0x61c] ss:$12 sps:$4 sm:$0xff]   ;;  %v4327_v57 = vld [vmem:[%s4684_s25 + $0xe0] ss:$12 sps:$4 sm:$0xff]  }
  0x6e   : > { %2898 = vmatprep.subr.bf16.mxu0 %v4252_v58  ;;  %v4331_v58 = vld [vmem:[%s4684_s25 + $0x634] ss:$12 sps:$4 sm:$0xff]  }
  0x70   : > { %2817 = vmatpush1.bf16.msra.mxu1 %v4247_v59  ;;  %v4332_v59 = vld [vmem:[%s4684_s25 + $0xf8] ss:$12 sps:$4 sm:$0xff]  }
  0x71   : > { %2899 = vmatpush1.bf16.msra.mxu0 %v4250_v60  ;;  %2818 = vmatprep.subr.bf16.mxu1 %v4255_v61  ;;  %v4329_v60 = vld [vmem:[%s4684_s25 + $0x630] ss:$12 sps:$4 sm:$0xff]   ;;  %v4333_v61 = vld [vmem:[%s4684_s25 + $0x38] ss:$12 sps:$4 sm:$0xff]  }
  0x72   : > { %2900 = vmatprep.subr.bf16.mxu0 %v4258_v62  ;;  %v4336_v62 = vld [vmem:[%s4684_s25 + $0x64c] ss:$12 sps:$4 sm:$0xff]  }
  0x74   : > { %2819 = vmatpush1.bf16.msra.mxu1 %v4253_v63  ;;  %v4337_v63 = vld [vmem:[%s4684_s25 + $0x110] ss:$12 sps:$4 sm:$0xff]  }
  0x75   : > { %2901 = vmatpush1.bf16.msra.mxu0 %v4256_v0  ;;  %2820 = vmatprep.subr.bf16.mxu1 %v4261_v1  ;;  %v4334_v0 = vld [vmem:[%s4684_s25 + $0x648] ss:$12 sps:$4 sm:$0xff]  }
  0x76   : > { %2902 = vmatprep.subr.bf16.mxu0 %v4264_v3  ;;  %v4881_v1 = vld [vmem:[%s4679_s21 + $0x10] sm:$0xff] }
  0x77   : > { %v4338_v3 = vld [vmem:[%s4684_s25 + $0x50] ss:$12 sps:$4 sm:$0xff]  }
  0x78   : > { %2821 = vmatpush1.bf16.msra.mxu1 %v4259_v4  ;;  %v4341_v4 = vld [vmem:[%s4684_s25 + $0x664] ss:$12 sps:$4 sm:$0xff]  }
  0x79   : > { %2903 = vmatpush1.bf16.msra.mxu0 %v4262_v5  ;;  %2822 = vmatprep.subr.bf16.mxu1 %v4267_v6  ;;  %v4342_v5 = vld [vmem:[%s4684_s25 + $0x128] ss:$12 sps:$4 sm:$0xff]   ;;  %v4339_v6 = vld [vmem:[%s4684_s25 + $0x660] ss:$12 sps:$4 sm:$0xff]  }
  0x7a   : > { %2904 = vmatprep.subr.bf16.mxu0 %v4270_v7 }
  0x7c   : > { %2823 = vmatpush1.bf16.msra.mxu1 %v4265_v8  ;;  %v4343_v8 = vld [vmem:[%s4684_s25 + $0x68] ss:$12 sps:$4 sm:$0xff]  }
  0x7d   : > { %2905 = vmatpush1.bf16.msra.mxu0 %v4268_v9  ;;  %2824 = vmatprep.subr.bf16.mxu1 %v4273_v10  ;;  %v4346_v9 = vld [vmem:[%s4684_s25 + $0x67c] ss:$12 sps:$4 sm:$0xff]  }
  0x7e   : > { %2906 = vmatprep.subr.bf16.mxu0 %v4276_v11  ;;  %v4347_v11 = vld [vmem:[%s4684_s25 + $0x140] ss:$12 sps:$4 sm:$0xff]  }
  0x80   : > { %2825 = vmatpush1.bf16.msra.mxu1 %v4271_v12  ;;  %v4344_v12 = vld [vmem:[%s4684_s25 + $0x678] ss:$12 sps:$4 sm:$0xff]  }
  0x81   : > { %2907 = vmatpush1.bf16.msra.mxu0 %v4274_v13  ;;  %2826 = vmatprep.subr.bf16.mxu1 %v4279_v15  ;;  %v4348_v13 = vld [vmem:[%s4684_s25 + $0x80] ss:$12 sps:$4 sm:$0xff]  }
  0x82   : > { %2908 = vmatprep.subr.bf16.mxu0 %v4282_v16  ;;  %v4351_v15 = vld [vmem:[%s4684_s25 + $0x694] ss:$12 sps:$4 sm:$0xff]   ;;  %v4352_v16 = vld [vmem:[%s4684_s25 + $0x158] ss:$12 sps:$4 sm:$0xff]  }
  0x84   : > { %2827 = vmatpush1.bf16.msra.mxu1 %v4277_v17  ;;  %v4349_v17 = vld [vmem:[%s4684_s25 + $0x690] ss:$12 sps:$4 sm:$0xff]  }
  0x85   : > { %2909 = vmatpush1.bf16.msra.mxu0 %v4280_v18  ;;  %2828 = vmatprep.subr.bf16.mxu1 %v4285_v19  ;;  %v4353_v18 = vld [vmem:[%s4684_s25 + $0x98] ss:$12 sps:$4 sm:$0xff]  }
  0x86   : > { %2910 = vmatprep.subr.bf16.mxu0 %v4288_v21  ;;  %v4356_v19 = vld [vmem:[%s4684_s25 + $0x6ac] ss:$12 sps:$4 sm:$0xff]   ;;  %v4357_v21 = vld [vmem:[%s4684_s25 + $0x170] ss:$12 sps:$4 sm:$0xff]  }
  0x88   : > { %2829 = vmatpush1.bf16.msra.mxu1 %v4283_v22  ;;  %v4354_v22 = vld [vmem:[%s4684_s25 + $0x6a8] ss:$12 sps:$4 sm:$0xff]  }
  0x89   : > { %2911 = vmatpush1.bf16.msra.mxu0 %v4286_v23  ;;  %2830 = vmatprep.subr.bf16.mxu1 %v4291_v24  ;;  %v4358_v23 = vld [vmem:[%s4684_s25 + $0xb0] ss:$12 sps:$4 sm:$0xff]  }
  0x8a   : > { %2912 = vmatprep.subr.bf16.mxu0 %v4294_v25  ;;  %v4361_v24 = vld [vmem:[%s4684_s25 + $0x6c4] ss:$12 sps:$4 sm:$0xff]   ;;  %v4362_v25 = vld [vmem:[%s4684_s25 + $0x248] ss:$12 sps:$4 sm:$0xff]  }
  0x8c   : > { %2831 = vmatpush1.bf16.msra.mxu1 %v4289_v26  ;;  %v4359_v26 = vld [vmem:[%s4684_s25 + $0x6c0] ss:$12 sps:$4 sm:$0xff]  }
  0x8d   : > { %2913 = vmatpush1.bf16.msra.mxu0 %v4292_v27  ;;  %2832 = vmatprep.subr.bf16.mxu1 %v4297_v28  ;;  %v4363_v27 = vld [vmem:[%s4684_s25 + $0x188] ss:$12 sps:$4 sm:$0xff]  }
  0x8e   : > { %2914 = vmatprep.subr.bf16.mxu0 %v4300_v29  ;;  %v4366_v28 = vld [vmem:[%s4684_s25 + $0x6dc] ss:$12 sps:$4 sm:$0xff]   ;;  %v4367_v29 = vld [vmem:[%s4684_s25 + $0x260] ss:$12 sps:$4 sm:$0xff]  }
  0x90   : > { %2833 = vmatpush1.bf16.msra.mxu1 %v4295_v30  ;;  %v4364_v30 = vld [vmem:[%s4684_s25 + $0x6d8] ss:$12 sps:$4 sm:$0xff]  }
  0x91   : > { %2915 = vmatpush1.bf16.msra.mxu0 %v4298_v33  ;;  %2834 = vmatprep.subr.bf16.mxu1 %v4303_v34  ;;  %v4368_v33 = vld [vmem:[%s4684_s25 + $0x1a0] ss:$12 sps:$4 sm:$0xff]  }
  0x92   : > { %2916 = vmatprep.subr.bf16.mxu0 %v4306_v35  ;;  %v4371_v34 = vld [vmem:[%s4684_s25 + $0x6f4] ss:$12 sps:$4 sm:$0xff]   ;;  %v4372_v35 = vld [vmem:[%s4684_s25 + $0x278] ss:$12 sps:$4 sm:$0xff]  }
  0x94   : > { %2835 = vmatpush1.bf16.msra.mxu1 %v4301_v36  ;;  %v4369_v36 = vld [vmem:[%s4684_s25 + $0x6f0] ss:$12 sps:$4 sm:$0xff]  }
  0x95   : > { %2917 = vmatpush1.bf16.msra.mxu0 %v4304_v37  ;;  %2836 = vmatprep.subr.bf16.mxu1 %v4309_v38  ;;  %v4373_v37 = vld [vmem:[%s4684_s25 + $0x1b8] ss:$12 sps:$4 sm:$0xff]   ;;  %v4377_v38 = vld [vmem:[%s4684_s25 + $0x290] ss:$12 sps:$4 sm:$0xff]  }
  0x96   : > { %2918 = vmatprep.subr.bf16.mxu0 %v4312_v41  ;;  %v4374_v41 = vld [vmem:[%s4684_s25 + $0x708] ss:$12 sps:$4 sm:$0xff]  }
  0x98   : > { %2837 = vmatpush1.bf16.msra.mxu1 %v4307_v42  ;;  %v4378_v42 = vld [vmem:[%s4684_s25 + $0x1d0] ss:$12 sps:$4 sm:$0xff]  }
  0x99   : > { %2919 = vmatpush1.bf16.msra.mxu0 %v4310_v43  ;;  %2838 = vmatprep.subr.bf16.mxu1 %v4315_v44  ;;  %v4382_v43 = vld [vmem:[%s4684_s25 + $0x2a8] ss:$12 sps:$4 sm:$0xff]   ;;  %v4379_v44 = vld [vmem:[%s4684_s25 + $0x720] ss:$12 sps:$4 sm:$0xff]  }
  0x9a   : > { %2920 = vmatprep.subr.bf16.mxu0 %v4318_v47  ;;  %v4383_v47 = vld [vmem:[%s4684_s25 + $0x1e8] ss:$12 sps:$4 sm:$0xff]  }
  0x9c   : > { %2839 = vmatpush1.bf16.msra.mxu1 %v4313_v48  ;;  %v4386_v48 = vld [vmem:[%s4684_s25 + $0x73c] ss:$12 sps:$4 sm:$0xff]  }
  0x9d   : > { %2921 = vmatpush1.bf16.msra.mxu0 %v4316_v49  ;;  %3886 = vmatprep.subr.bf16.mxu1 %v4322_v51  ;;  %v4387_v49 = vld [vmem:[%s4684_s25 + $0x2c0] ss:$12 sps:$4 sm:$0xff]  }
  0x9e   : > { %2931 = vmatprep.subr.bf16.mxu0 %v4321_v50  ;;  %v4384_v50 = vld [vmem:[%s4684_s25 + $0x738] ss:$12 sps:$4 sm:$0xff]   ;;  %v4388_v51 = vld [vmem:[%s4684_s25 + $0x200] ss:$12 sps:$4 sm:$0xff]  }
  0x9f   : > { %2841 = vmatmul.mubr.bf16.vlgmr.msra.gmra.mrb[0].mxu1 %v4859_v53 }
  0xa0   : > { %2923 = vmatmul.mubr.bf16.vlgmr.msra.gmra.mrb[0].mxu0 %v4863_v54  ;;  %3887 = vmatpush3.bf16.msra.mxu1 %v4323_v55  ;;  %v4392_v55 = vld [vmem:[%s4684_s25 + $0x2d8] ss:$12 sps:$4 sm:$0xff]  }
  0xa1   : > { %2932 = vmatpush1.bf16.msra.mxu0 %v4319_v52  ;;  %3888 = vmatprep.subr.bf16.mxu1 %v4327_v57  ;;  %v4391_v52 = vld [vmem:[%s4684_s25 + $0x754] ss:$12 sps:$4 sm:$0xff]   ;;  %v304_v57 = vcombine.high %v4881_v1, %v4881_v1 }
  0xa2   : > { %2933 = vmatprep.subr.bf16.mxu0 %v4326_v56  ;;  %3127 = vmatprep.mubr.bf16.mxu1 %v4748_v14  ;;  %v4887_v14 = vrot.slane %v4881_v1, %v4736_v2  ;;  %v4389_v56 = vld [vmem:[%s4684_s25 + $0x750] ss:$12 sps:$4 sm:$0xff]  }
  0xa4   : > { %3889 = vmatpush3.bf16.msra.mxu1 %v4328_v32  ;;  %v319_v7 = vcombine.high %v4887_v14, %v4887_v14  ;;  %v4396_v32 = vld [vmem:[%s4684_s25 + $0x76c] ss:$12 sps:$4 sm:$0xff]  }
  0xa5   : > { %2934 = vmatpush1.bf16.msra.mxu0 %v4324_v31  ;;  %3890 = vmatprep.subr.bf16.mxu1 %v4332_v59  ;;  %v4393_v31 = vld [vmem:[%s4684_s25 + $0x218] ss:$12 sps:$4 sm:$0xff]   ;;  %v4944_v59 = vrot.slane %v304_v57, %v4736_v2  ;;  %v4463_v57 = vld [vmem:[%s4684_s25 + $0x4e8] ss:$12 sps:$4 sm:$0xff]  }
  0xa6   : > { %2935 = vmatprep.subr.bf16.mxu0 %v4331_v58  ;;  %v4895_v10 = vpack.c.bf16 %v319_v7, %v319_v7  ;;  %v4397_v58 = vld [vmem:[%s4684_s25 + $0x2f0] ss:$12 sps:$4 sm:$0xff]  }
  0xa7   : > { %v320_v1 = vcombine.high %v4944_v59, %v4944_v59 }
  0xa8   : > { %3891 = vmatpush3.bf16.msra.mxu1 %v4333_v61  ;;  %2963 = vmatprep.mubr.bf16.mxu0 %v4895_v10  ;;  %v4398_v61 = vld [vmem:[%s4684_s25 + $0x230] ss:$12 sps:$4 sm:$0xff]  }
  0xa9   : > { %2936 = vmatpush1.bf16.msra.mxu0 %v4329_v60  ;;  %3892 = vmatprep.subr.bf16.mxu1 %v4337_v63  ;;  %v4394_v60 = vld [vmem:[%s4684_s25 + $0x768] ss:$12 sps:$4 sm:$0xff]   ;;  %v4960_v7 = vpack.c.bf16 %v320_v1, %v320_v1  ;;  %v5023_v1 = vld [vmem:[%s4679_s21 + $0x18] sm:$0x3f] }
  0xaa   : > { %2937 = vmatprep.subr.bf16.mxu0 %v4336_v62  ;;  %v4401_v62 = vld [vmem:[%s4684_s25 + $0x784] ss:$12 sps:$4 sm:$0xff]   ;;  %v4402_v63 = vld [vmem:[%s4684_s25 + $0x3c8] ss:$12 sps:$4 sm:$0xff]  }
  0xac   : > { %3893 = vmatpush3.bf16.msra.mxu1 %v4338_v3  ;;  %v4955_v3 = vpack.c.bf16 %v4887_v14, %v4887_v14  ;;  %v4404_v14 = vld [vmem:[%s4684_s25 + $0x798] ss:$12 sps:$4 sm:$0xff]  }
  0xad   : > { %2938 = vmatpush1.bf16.msra.mxu0 %v4334_v0  ;;  %3894 = vmatprep.subr.bf16.mxu1 %v4342_v5  ;;  %v4399_v0 = vld [vmem:[%s4684_s25 + $0x780] ss:$12 sps:$4 sm:$0xff]   ;;  %v4406_v5 = vld [vmem:[%s4684_s25 + $0x79c] ss:$12 sps:$4 sm:$0xff]  }
  0xae   : > { %2939 = vmatprep.subr.bf16.mxu0 %v4341_v4  ;;  %v4403_v4 = vld [vmem:[%s4684_s25 + $0x308] ss:$12 sps:$4 sm:$0xff]  }
  0xb0   : > { %3895 = vmatpush3.bf16.msra.mxu1 %v4343_v8  ;;  %v4408_v8 = vld [vmem:[%s4684_s25 + $0x320] ss:$12 sps:$4 sm:$0xff]  }
  0xb1   : > { %2940 = vmatpush1.bf16.msra.mxu0 %v4339_v6  ;;  %3896 = vmatprep.subr.bf16.mxu1 %v4347_v11  ;;  %v4407_v6 = vld [vmem:[%s4684_s25 + $0x3e0] ss:$12 sps:$4 sm:$0xff]   ;;  %v4412_v11 = vld [vmem:[%s4684_s25 + $0x3f8] ss:$12 sps:$4 sm:$0xff]  }
  0xb2   : > { %2941 = vmatprep.subr.bf16.mxu0 %v4346_v9  ;;  %v4411_v9 = vld [vmem:[%s4684_s25 + $0x7b4] ss:$12 sps:$4 sm:$0xff]  }
  0xb4   : > { %3897 = vmatpush3.bf16.msra.mxu1 %v4348_v13  ;;  %v4416_v13 = vld [vmem:[%s4684_s25 + $0x7cc] ss:$12 sps:$4 sm:$0xff]  }
  0xb5   : > { %2942 = vmatpush1.bf16.msra.mxu0 %v4344_v12  ;;  %3898 = vmatprep.subr.bf16.mxu1 %v4352_v16  ;;  %v4413_v12 = vld [vmem:[%s4684_s25 + $0x338] ss:$12 sps:$4 sm:$0xff]   ;;  %v4414_v16 = vld [vmem:[%s4684_s25 + $0x7c8] ss:$12 sps:$4 sm:$0xff]  }
  0xb6   : > { %2943 = vmatprep.subr.bf16.mxu0 %v4351_v15  ;;  %v4417_v15 = vld [vmem:[%s4684_s25 + $0x410] ss:$12 sps:$4 sm:$0xff]  }
  0xb8   : > { %3899 = vmatpush3.bf16.msra.mxu1 %v4353_v18  ;;  %v4422_v18 = vld [vmem:[%s4684_s25 + $0x428] ss:$12 sps:$4 sm:$0xff]  }
  0xb9   : > { %2944 = vmatpush1.bf16.msra.mxu0 %v4349_v17  ;;  %3900 = vmatprep.subr.bf16.mxu1 %v4357_v21  ;;  %v4418_v17 = vld [vmem:[%s4684_s25 + $0x350] ss:$12 sps:$4 sm:$0xff]   ;;  %v4423_v21 = vld [vmem:[%s4684_s25 + $0x368] ss:$12 sps:$4 sm:$0xff]  }
  0xba   : > { %2945 = vmatprep.subr.bf16.mxu0 %v4356_v19  ;;  %v4419_v19 = vld [vmem:[%s4684_s25 + $0x7e0] ss:$12 sps:$4 sm:$0xff]  }
  0xbc   : > { %3901 = vmatpush3.bf16.msra.mxu1 %v4358_v23  ;;  %v4427_v23 = vld [vmem:[%s4684_s25 + $0x440] ss:$12 sps:$4 sm:$0xff]  }
  0xbd   : > { %2946 = vmatpush1.bf16.msra.mxu0 %v4354_v22  ;;  %3908 = vmatprep.subr.bf16.mxu1 %v4362_v25  ;;  %v4426_v22 = vld [vmem:[%s4684_s25 + $0x7fc] ss:$12 sps:$4 sm:$0xff]   ;;  %v4428_v25 = vld [vmem:[%s4684_s25 + $0x380] ss:$12 sps:$4 sm:$0xff]  }
  0xbe   : > { %2947 = vmatprep.subr.bf16.mxu0 %v4361_v24  ;;  %v4424_v24 = vld [vmem:[%s4684_s25 + $0x7f8] ss:$12 sps:$4 sm:$0xff]  }
  0xbf   : > { %3128 = vmatmul.mubr.bf16.vlgmr.msra.gmra.mrb[4].mxu1 %v4780_v39  ;;  %v4376_v39 = vld [vmem:[%s4684_s25 + $0x70c] ss:$12 sps:$4 sm:$0xff]  }
  0xc0   : > { %3909 = vmatpush3.bf16.msra.mxu1 %v4363_v27  ;;  %3167 = vmatprep.mubr.bf16.mxu1 %v4788_v45  ;;  %v4381_v45 = vld [vmem:[%s4684_s25 + $0x724] ss:$12 sps:$4 sm:$0xff]  }
  0xc1   : > { %2948 = vmatpush1.bf16.msra.mxu0 %v4359_v26  ;;  %3910 = vmatprep.subr.bf16.mxu1 %v4367_v29  ;;  %v4431_v26 = vld [vmem:[%s4684_s25 + $0x814] ss:$12 sps:$4 sm:$0xff]   ;;  %v4432_v27 = vld [vmem:[%s4684_s25 + $0x458] ss:$12 sps:$4 sm:$0xff]  }
  0xc2   : > { %2949 = vmatprep.subr.bf16.mxu0 %v4366_v28  ;;  %v4429_v28 = vld [vmem:[%s4684_s25 + $0x810] ss:$12 sps:$4 sm:$0xff]   ;;  %v4433_v29 = vld [vmem:[%s4684_s25 + $0x398] ss:$12 sps:$4 sm:$0xff]  }
  0xc4   : > { %3911 = vmatpush3.bf16.msra.mxu1 %v4368_v33  ;;  %v4437_v33 = vld [vmem:[%s4684_s25 + $0x470] ss:$12 sps:$4 sm:$0xff]  }
  0xc5   : > { %2950 = vmatpush1.bf16.msra.mxu0 %v4364_v30  ;;  %3912 = vmatprep.subr.bf16.mxu1 %v4372_v35  ;;  %v4436_v30 = vld [vmem:[%s4684_s25 + $0x82c] ss:$12 sps:$4 sm:$0xff]   ;;  %v4438_v35 = vld [vmem:[%s4684_s25 + $0x3b0] ss:$12 sps:$4 sm:$0xff]  }
  0xc6   : > { %2951 = vmatprep.subr.bf16.mxu0 %v4371_v34  ;;  %v4434_v34 = vld [vmem:[%s4684_s25 + $0x828] ss:$12 sps:$4 sm:$0xff]  }
  0xc8   : > { %3913 = vmatpush3.bf16.msra.mxu1 %v4373_v37  ;;  %v4442_v37 = vld [vmem:[%s4684_s25 + $0x548] ss:$12 sps:$4 sm:$0xff]  }
  0xc9   : > { %2952 = vmatpush1.bf16.msra.mxu0 %v4369_v36  ;;  %3914 = vmatprep.subr.bf16.mxu1 %v4377_v38  ;;  %v4441_v36 = vld [vmem:[%s4684_s25 + $0x844] ss:$12 sps:$4 sm:$0xff]   ;;  %v4443_v38 = vld [vmem:[%s4684_s25 + $0x488] ss:$12 sps:$4 sm:$0xff]  }
  0xca   : > { %2953 = vmatprep.subr.bf16.mxu0 %v4376_v39  ;;  %v4439_v39 = vld [vmem:[%s4684_s25 + $0x840] ss:$12 sps:$4 sm:$0xff]  }
  0xcc   : > { %3915 = vmatpush3.bf16.msra.mxu1 %v4378_v42  ;;  %v4447_v42 = vld [vmem:[%s4684_s25 + $0x560] ss:$12 sps:$4 sm:$0xff]  }
  0xcd   : > { %2954 = vmatpush1.bf16.msra.mxu0 %v4374_v41  ;;  %3916 = vmatprep.subr.bf16.mxu1 %v4382_v43  ;;  %v4446_v41 = vld [vmem:[%s4684_s25 + $0x85c] ss:$12 sps:$4 sm:$0xff]   ;;  %v4448_v43 = vld [vmem:[%s4684_s25 + $0x4a0] ss:$12 sps:$4 sm:$0xff]  }
  0xce   : > { %2955 = vmatprep.subr.bf16.mxu0 %v4381_v45  ;;  %v4444_v45 = vld [vmem:[%s4684_s25 + $0x858] ss:$12 sps:$4 sm:$0xff]  }
  0xd0   : > { %3917 = vmatpush3.bf16.msra.mxu1 %v4383_v47  ;;  %v4452_v47 = vld [vmem:[%s4684_s25 + $0x578] ss:$12 sps:$4 sm:$0xff]  }
  0xd1   : > { %2956 = vmatpush1.bf16.msra.mxu0 %v4379_v44  ;;  %3918 = vmatprep.subr.bf16.mxu1 %v4387_v49  ;;  %v4451_v44 = vld [vmem:[%s4684_s25 + $0x874] ss:$12 sps:$4 sm:$0xff]   ;;  %v4453_v49 = vld [vmem:[%s4684_s25 + $0x4b8] ss:$12 sps:$4 sm:$0xff]  }
  0xd2   : > { %2957 = vmatprep.subr.bf16.mxu0 %v4386_v48  ;;  %v4449_v48 = vld [vmem:[%s4684_s25 + $0x870] ss:$12 sps:$4 sm:$0xff]  }
  0xd4   : > { %3919 = vmatpush3.bf16.msra.mxu1 %v4388_v51  ;;  %v4454_v51 = vld [vmem:[%s4684_s25 + $0x888] ss:$12 sps:$4 sm:$0xff]  }
  0xd5   : > { %2958 = vmatpush1.bf16.msra.mxu0 %v4384_v50  ;;  %3920 = vmatprep.subr.bf16.mxu1 %v4392_v55  ;;  %v4457_v50 = vld [vmem:[%s4684_s25 + $0x590] ss:$12 sps:$4 sm:$0xff]   ;;  %v4462_v55 = vld [vmem:[%s4684_s25 + $0x5a8] ss:$12 sps:$4 sm:$0xff]  }
  0xd6   : > { %2959 = vmatprep.subr.bf16.mxu0 %v4391_v52  ;;  %v4458_v52 = vld [vmem:[%s4684_s25 + $0x4d0] ss:$12 sps:$4 sm:$0xff]  }
  0xd8   : > { %3921 = vmatpush3.bf16.msra.mxu1 %v4393_v31  ;;  %v4466_v31 = vld [vmem:[%s4684_s25 + $0x8bc] ss:$12 sps:$4 sm:$0xff]  }
  0xd9   : > { %2960 = vmatpush1.bf16.msra.mxu0 %v4389_v56  ;;  %3922 = vmatprep.subr.bf16.mxu1 %v4397_v58  ;;  %v4459_v56 = vld [vmem:[%s4684_s25 + $0x8a0] ss:$12 sps:$4 sm:$0xff]   ;;  %v4464_v58 = vld [vmem:[%s4684_s25 + $0x8b8] ss:$12 sps:$4 sm:$0xff]  }
  0xda   : > { %2961 = vmatprep.subr.bf16.mxu0 %v4396_v32  ;;  %v4467_v32 = vld [vmem:[%s4684_s25 + $0x5c0] ss:$12 sps:$4 sm:$0xff]  }
  0xdc   : > { %3923 = vmatpush3.bf16.msra.mxu1 %v4398_v61  ;;  %v4471_v61 = vld [vmem:[%s4684_s25 + $0x8d4] ss:$12 sps:$4 sm:$0xff]  }
  0xdd   : > { %2962 = vmatpush1.bf16.msra.mxu0 %v4394_v60  ;;  %3930 = vmatprep.subr.bf16.mxu1 %v4402_v63  ;;  %v4468_v60 = vld [vmem:[%s4684_s25 + $0x500] ss:$12 sps:$4 sm:$0xff]   ;;  %v4469_v63 = vld [vmem:[%s4684_s25 + $0x8d0] ss:$12 sps:$4 sm:$0xff]  }
  0xde   : > { %2972 = vmatprep.subr.bf16.mxu0 %v4401_v62  ;;  %v4472_v62 = vld [vmem:[%s4684_s25 + $0x5d8] ss:$12 sps:$4 sm:$0xff]  }
  0xdf   : > { %3168 = vmatmul.mubr.bf16.vlgmr.msra.gmra.mrb[8].mxu1 %v4859_v53  ;;  %v4409_v53 = vld [vmem:[%s4684_s25 + $0x7b0] ss:$12 sps:$4 sm:$0xff]  }
  0xe0   : > { %2964 = vmatmul.mubr.bf16.vlgmr.msra.gmra.mrb[0].mxu0 %v4955_v3  ;;  %3931 = vmatpush3.bf16.msra.mxu1 %v4403_v4  ;;  %v4476_v4 = vld [vmem:[%s4684_s25 + $0x8ec] ss:$12 sps:$4 sm:$0xff]  }
  0xe1   : > { %2973 = vmatpush1.bf16.msra.mxu0 %v4399_v0  ;;  %3932 = vmatprep.subr.bf16.mxu1 %v4407_v6  ;;  %v4473_v0 = vld [vmem:[%s4684_s25 + $0x518] ss:$12 sps:$4 sm:$0xff]   ;;  %v4474_v6 = vld [vmem:[%s4684_s25 + $0x8e8] ss:$12 sps:$4 sm:$0xff]  }
  0xe2   : > { %2974 = vmatprep.subr.bf16.mxu0 %v4406_v5  ;;  %3207 = vmatprep.mubr.bf16.mxu1 %v4754_v20  ;;  %v4421_v20 = vld [vmem:[%s4684_s25 + $0x7e4] ss:$12 sps:$4 sm:$0xff]  }
  0xe3   : > { %3004 = vmatprep.mubr.bf16.mxu0 %v4960_v7  ;;  %v4477_v5 = vld [vmem:[%s4684_s25 + $0x5f0] ss:$12 sps:$4 sm:$0xff]  }
  0xe4   : > { %3933 = vmatpush3.bf16.msra.mxu1 %v4408_v8  ;;  %v4478_v8 = vld [vmem:[%s4684_s25 + $0x530] ss:$12 sps:$4 sm:$0xff]  }
  0xe5   : > { %2975 = vmatpush1.bf16.msra.mxu0 %v4404_v14  ;;  %3934 = vmatprep.subr.bf16.mxu1 %v4412_v11  ;;  %v5030_v14 = vrot.slane %v5023_v1, %v4736_v2  ;;  %v4483_v11 = vld [vmem:[%s4684_s25 + $0x6c8] ss:$12 sps:$4 sm:$0xff]  }
  0xe6   : > { %2976 = vmatprep.subr.bf16.mxu0 %v4411_v9  ;;  %v4482_v9 = vld [vmem:[%s4684_s25 + $0x904] ss:$12 sps:$4 sm:$0xff]  }
  0xe8   : > { %3935 = vmatpush3.bf16.msra.mxu1 %v4413_v12  ;;  %v4480_v12 = vld [vmem:[%s4684_s25 + $0x900] ss:$12 sps:$4 sm:$0xff]  }
  0xe9   : > { %2977 = vmatpush1.bf16.msra.mxu0 %v4409_v53  ;;  %3936 = vmatprep.subr.bf16.mxu1 %v4417_v15  ;;  %v336_v53 = vcombine.high %v5030_v14, %v5030_v14  ;;  %v4484_v15 = vld [vmem:[%s4684_s25 + $0x608] ss:$12 sps:$4 sm:$0xff]  }
  0xea   : > { %2978 = vmatprep.subr.bf16.mxu0 %v4416_v13  ;;  %v5040_v13 = vpack.c.bf16 %v4944_v59, %v4944_v59  ;;  %v4489_v59 = vld [vmem:[%s4684_s25 + $0x620] ss:$12 sps:$4 sm:$0xff]  }
  0xec   : > { %3937 = vmatpush3.bf16.msra.mxu1 %v4418_v17  ;;  %v4488_v17 = vld [vmem:[%s4684_s25 + $0x6e0] ss:$12 sps:$4 sm:$0xff]  }
  0xed   : > { %2979 = vmatpush1.bf16.msra.mxu0 %v4414_v16  ;;  %3938 = vmatprep.subr.bf16.mxu1 %v4422_v18  ;;  %v4487_v16 = vld [vmem:[%s4684_s25 + $0x91c] ss:$12 sps:$4 sm:$0xff]   ;;  %v5046_v18 = vpack.c.bf16 %v336_v53, %v336_v53  ;;  %v4557_v53 = vld [vmem:[%s4684_s25 + $0xa6c] ss:$12 sps:$4 sm:$0xff]  }
  0xee   : > { %2980 = vmatprep.subr.bf16.mxu0 %v4421_v20  ;;  %v4485_v20 = vld [vmem:[%s4684_s25 + $0x918] ss:$12 sps:$4 sm:$0xff]  }
  0xf0   : > { %3939 = vmatpush3.bf16.msra.mxu1 %v4423_v21  ;;  %v4493_v21 = vld [vmem:[%s4684_s25 + $0x6f8] ss:$12 sps:$4 sm:$0xff]  }
  0xf1   : > { %2981 = vmatpush1.bf16.msra.mxu0 %v4419_v19  ;;  %3940 = vmatprep.subr.bf16.mxu1 %v4427_v23  ;;  %v4492_v19 = vld [vmem:[%s4684_s25 + $0x934] ss:$12 sps:$4 sm:$0xff]   ;;  %v4497_v23 = vld [vmem:[%s4684_s25 + $0x94c] ss:$12 sps:$4 sm:$0xff]  }
  0xf2   : > { %2982 = vmatprep.subr.bf16.mxu0 %v4426_v22  ;;  %v4490_v22 = vld [vmem:[%s4684_s25 + $0x930] ss:$12 sps:$4 sm:$0xff]  }
  0xf4   : > { %3941 = vmatpush3.bf16.msra.mxu1 %v4428_v25  ;;  %v4495_v25 = vld [vmem:[%s4684_s25 + $0x948] ss:$12 sps:$4 sm:$0xff]  }
  0xf5   : > { %2983 = vmatpush1.bf16.msra.mxu0 %v4424_v24  ;;  %3942 = vmatprep.subr.bf16.mxu1 %v4432_v27  ;;  %v4498_v24 = vld [vmem:[%s4684_s25 + $0x710] ss:$12 sps:$4 sm:$0xff]   ;;  %v4503_v27 = vld [vmem:[%s4684_s25 + $0x728] ss:$12 sps:$4 sm:$0xff]  }
  0xf6   : > { %2984 = vmatprep.subr.bf16.mxu0 %v4431_v26  ;;  %v4499_v26 = vld [vmem:[%s4684_s25 + $0x650] ss:$12 sps:$4 sm:$0xff]  }
  0xf8   : > { %3943 = vmatpush3.bf16.msra.mxu1 %v4433_v29  ;;  %v4504_v29 = vld [vmem:[%s4684_s25 + $0x668] ss:$12 sps:$4 sm:$0xff]  }
  0xf9   : > { %2985 = vmatpush1.bf16.msra.mxu0 %v4429_v28  ;;  %3944 = vmatprep.subr.bf16.mxu1 %v4437_v33  ;;  %v4500_v28 = vld [vmem:[%s4684_s25 + $0x960] ss:$12 sps:$4 sm:$0xff]  }
  0xfa   : > { %2986 = vmatprep.subr.bf16.mxu0 %v4436_v30  ;;  %v4507_v30 = vld [vmem:[%s4684_s25 + $0x97c] ss:$12 sps:$4 sm:$0xff]   ;;  %v4508_v33 = vld [vmem:[%s4684_s25 + $0x740] ss:$12 sps:$4 sm:$0xff]  }
  0xfc   : > { %3945 = vmatpush3.bf16.msra.mxu1 %v4438_v35  ;;  %v4509_v35 = vld [vmem:[%s4684_s25 + $0x680] ss:$12 sps:$4 sm:$0xff]  }
  0xfd   : > { %2987 = vmatpush1.bf16.msra.mxu0 %v4434_v34  ;;  %3952 = vmatprep.subr.bf16.mxu1 %v4442_v37  ;;  %v4505_v34 = vld [vmem:[%s4684_s25 + $0x978] ss:$12 sps:$4 sm:$0xff]  }
  0xfe   : > { %2988 = vmatprep.subr.bf16.mxu0 %v4441_v36  ;;  %v4512_v36 = vld [vmem:[%s4684_s25 + $0x994] ss:$12 sps:$4 sm:$0xff]   ;;  %v4513_v37 = vld [vmem:[%s4684_s25 + $0x758] ss:$12 sps:$4 sm:$0xff]  }
  0xff   : > { %3208 = vmatmul.mubr.bf16.vlgmr.msra.gmra.mrb[12].mxu1 %v4782_v40  ;;  %v4456_v40 = vld [vmem:[%s4684_s25 + $0x88c] ss:$12 sps:$4 sm:$0xff]  }
 0x100   : > { %3953 = vmatpush3.bf16.msra.mxu1 %v4443_v38  ;;  %3247 = vmatprep.mubr.bf16.mxu1 %v4790_v46  ;;  %v4461_v46 = vld [vmem:[%s4684_s25 + $0x8a4] ss:$12 sps:$4 sm:$0xff]  }
 0x101   : > { %2989 = vmatpush1.bf16.msra.mxu0 %v4439_v39  ;;  %3954 = vmatprep.subr.bf16.mxu1 %v4447_v42  ;;  %v4510_v39 = vld [vmem:[%s4684_s25 + $0x990] ss:$12 sps:$4 sm:$0xff]   ;;  %v4514_v38 = vld [vmem:[%s4684_s25 + $0x698] ss:$12 sps:$4 sm:$0xff]  }
 0x102   : > { %2990 = vmatprep.subr.bf16.mxu0 %v4446_v41  ;;  %v4517_v41 = vld [vmem:[%s4684_s25 + $0x9ac] ss:$12 sps:$4 sm:$0xff]   ;;  %v4518_v42 = vld [vmem:[%s4684_s25 + $0x770] ss:$12 sps:$4 sm:$0xff]  }
 0x104   : > { %3955 = vmatpush3.bf16.msra.mxu1 %v4448_v43  ;;  %v4519_v43 = vld [vmem:[%s4684_s25 + $0x6b0] ss:$12 sps:$4 sm:$0xff]  }
 0x105   : > { %2991 = vmatpush1.bf16.msra.mxu0 %v4444_v45  ;;  %3956 = vmatprep.subr.bf16.mxu1 %v4452_v47  ;;  %v4515_v45 = vld [vmem:[%s4684_s25 + $0x9a8] ss:$12 sps:$4 sm:$0xff]  }
 0x106   : > { %2992 = vmatprep.subr.bf16.mxu0 %v4451_v44  ;;  %v4522_v44 = vld [vmem:[%s4684_s25 + $0x9c4] ss:$12 sps:$4 sm:$0xff]   ;;  %v4523_v47 = vld [vmem:[%s4684_s25 + $0x848] ss:$12 sps:$4 sm:$0xff]  }
 0x108   : > { %3957 = vmatpush3.bf16.msra.mxu1 %v4453_v49  ;;  %v4524_v49 = vld [vmem:[%s4684_s25 + $0x788] ss:$12 sps:$4 sm:$0xff]  }
 0x109   : > { %2993 = vmatpush1.bf16.msra.mxu0 %v4449_v48  ;;  %3958 = vmatprep.subr.bf16.mxu1 %v4457_v50  ;;  %v4520_v48 = vld [vmem:[%s4684_s25 + $0x9c0] ss:$12 sps:$4 sm:$0xff]  }
 0x10a   : > { %2994 = vmatprep.subr.bf16.mxu0 %v4456_v40  ;;  %v4527_v40 = vld [vmem:[%s4684_s25 + $0x9dc] ss:$12 sps:$4 sm:$0xff]   ;;  %v4528_v50 = vld [vmem:[%s4684_s25 + $0x860] ss:$12 sps:$4 sm:$0xff]  }
 0x10c   : > { %3959 = vmatpush3.bf16.msra.mxu1 %v4458_v52  ;;  %v4529_v52 = vld [vmem:[%s4684_s25 + $0x7a0] ss:$12 sps:$4 sm:$0xff]  }
 0x10d   : > { %2995 = vmatpush1.bf16.msra.mxu0 %v4454_v51  ;;  %3960 = vmatprep.subr.bf16.mxu1 %v4462_v55  ;;  %v4525_v51 = vld [vmem:[%s4684_s25 + $0x9d8] ss:$12 sps:$4 sm:$0xff]  }
 0x10e   : > { %2996 = vmatprep.subr.bf16.mxu0 %v4461_v46  ;;  %v4532_v46 = vld [vmem:[%s4684_s25 + $0x9f4] ss:$12 sps:$4 sm:$0xff]   ;;  %v4533_v55 = vld [vmem:[%s4684_s25 + $0x878] ss:$12 sps:$4 sm:$0xff]  }
 0x110   : > { %3961 = vmatpush3.bf16.msra.mxu1 %v4463_v57  ;;  %v4537_v57 = vld [vmem:[%s4684_s25 + $0xa0c] ss:$12 sps:$4 sm:$0xff]  }
 0x111   : > { %2997 = vmatpush1.bf16.msra.mxu0 %v4459_v56  ;;  %3962 = vmatprep.subr.bf16.mxu1 %v4467_v32  ;;  %v4530_v56 = vld [vmem:[%s4684_s25 + $0x9f0] ss:$12 sps:$4 sm:$0xff]   ;;  %v4535_v32 = vld [vmem:[%s4684_s25 + $0xa08] ss:$12 sps:$4 sm:$0xff]  }
 0x112   : > { %2998 = vmatprep.subr.bf16.mxu0 %v4466_v31  ;;  %v4538_v31 = vld [vmem:[%s4684_s25 + $0x890] ss:$12 sps:$4 sm:$0xff]  }
 0x114   : > { %3963 = vmatpush3.bf16.msra.mxu1 %v4468_v60  ;;  %v4543_v60 = vld [vmem:[%s4684_s25 + $0x8a8] ss:$12 sps:$4 sm:$0xff]  }
 0x115   : > { %2999 = vmatpush1.bf16.msra.mxu0 %v4464_v58  ;;  %3964 = vmatprep.subr.bf16.mxu1 %v4472_v62  ;;  %v4539_v58 = vld [vmem:[%s4684_s25 + $0x7d0] ss:$12 sps:$4 sm:$0xff]   ;;  %v4544_v62 = vld [vmem:[%s4684_s25 + $0x7e8] ss:$12 sps:$4 sm:$0xff]  }
 0x116   : > { %3000 = vmatprep.subr.bf16.mxu0 %v4471_v61  ;;  %v4540_v61 = vld [vmem:[%s4684_s25 + $0xa20] ss:$12 sps:$4 sm:$0xff]  }
 0x118   : > { %3965 = vmatpush3.bf16.msra.mxu1 %v4473_v0  ;;  %v4548_v0 = vld [vmem:[%s4684_s25 + $0x8c0] ss:$12 sps:$4 sm:$0xff]  }
 0x119   : > { %3001 = vmatpush1.bf16.msra.mxu0 %v4469_v63  ;;  %3966 = vmatprep.subr.bf16.mxu1 %v4477_v5  ;;  %v4547_v63 = vld [vmem:[%s4684_s25 + $0xa3c] ss:$12 sps:$4 sm:$0xff]   ;;  %v4549_v5 = vld [vmem:[%s4684_s25 + $0x800] ss:$12 sps:$4 sm:$0xff]  }
 0x11a   : > { %3002 = vmatprep.subr.bf16.mxu0 %v4476_v4  ;;  %v4545_v4 = vld [vmem:[%s4684_s25 + $0xa38] ss:$12 sps:$4 sm:$0xff]  }
 0x11c   : > { %3967 = vmatpush3.bf16.msra.mxu1 %v4478_v8  ;;  %v4553_v8 = vld [vmem:[%s4684_s25 + $0x8d8] ss:$12 sps:$4 sm:$0xff]  }
 0x11d   : > { %3003 = vmatpush1.bf16.msra.mxu0 %v4474_v6  ;;  %3974 = vmatprep.subr.bf16.mxu1 %v4483_v11  ;;  %v4552_v6 = vld [vmem:[%s4684_s25 + $0xa54] ss:$12 sps:$4 sm:$0xff]   ;;  %v4554_v11 = vld [vmem:[%s4684_s25 + $0x818] ss:$12 sps:$4 sm:$0xff]  }
 0x11e   : > { %3013 = vmatprep.subr.bf16.mxu0 %v4482_v9  ;;  %v4550_v9 = vld [vmem:[%s4684_s25 + $0xa50] ss:$12 sps:$4 sm:$0xff]  }
 0x11f   : > { %3248 = vmatmul.mubr.bf16.vlgmr.msra.gmra.mrb[16].mxu1 %v4863_v54  ;;  %v4494_v54 = vld [vmem:[%s4684_s25 + $0x638] ss:$12 sps:$4 sm:$0xff]  }
 0x120   : > { %3005 = vmatmul.mubr.bf16.vlgmr.msra.gmra.mrb[0].mxu0 %v5040_v13  ;;  %3975 = vmatpush3.bf16.msra.mxu1 %v4484_v15  ;;  %v4555_v15 = vld [vmem:[%s4684_s25 + $0xa68] ss:$12 sps:$4 sm:$0xff]  }
 0x121   : > { %3014 = vmatpush1.bf16.msra.mxu0 %v4480_v12  ;;  %3976 = vmatprep.subr.bf16.mxu1 %v4488_v17  ;;  %v4558_v12 = vld [vmem:[%s4684_s25 + $0x8f0] ss:$12 sps:$4 sm:$0xff]  }
 0x122   : > { %3015 = vmatprep.subr.bf16.mxu0 %v4487_v16  ;;  %3287 = vmatprep.mubr.bf16.mxu1 %v4895_v10  ;;  %v4502_v10 = vld [vmem:[%s4684_s25 + $0x964] ss:$12 sps:$4 sm:$0xff]  }
 0x123   : > { %3045 = vmatprep.mubr.bf16.mxu0 %v5046_v18  ;;  %v4559_v16 = vld [vmem:[%s4684_s25 + $0x830] ss:$12 sps:$4 sm:$0xff]  }
 0x124   : > { %3977 = vmatpush3.bf16.msra.mxu1 %v4489_v59  ;;  %v4563_v17 = vld [vmem:[%s4684_s25 + $0xa84] ss:$12 sps:$4 sm:$0xff]   ;;  %v5115_v59 = vpack.c.bf16 %v5030_v14, %v5030_v14 }
 0x125   : > { %3016 = vmatpush1.bf16.msra.mxu0 %v4485_v20  ;;  %3978 = vmatprep.subr.bf16.mxu1 %v4493_v21  ;;  %v4564_v20 = vld [vmem:[%s4684_s25 + $0x9c8] ss:$12 sps:$4 sm:$0xff]   ;;  %v4566_v14 = vld [vmem:[%s4684_s25 + $0xa98] ss:$12 sps:$4 sm:$0xff]  }
 0x126   : > { %3017 = vmatprep.subr.bf16.mxu0 %v4492_v19  ;;  %v4561_v19 = vld [vmem:[%s4684_s25 + $0xa80] ss:$12 sps:$4 sm:$0xff]   ;;  %v4565_v21 = vld [vmem:[%s4684_s25 + $0x908] ss:$12 sps:$4 sm:$0xff]  }
 0x128   : > { %3979 = vmatpush3.bf16.msra.mxu1 %v4494_v54  ;;  %v4569_v54 = vld [vmem:[%s4684_s25 + $0x9e0] ss:$12 sps:$4 sm:$0xff]  }
 0x129   : > { %3018 = vmatpush1.bf16.msra.mxu0 %v4490_v22  ;;  %3980 = vmatprep.subr.bf16.mxu1 %v4498_v24  ;;  %v4568_v22 = vld [vmem:[%s4684_s25 + $0xa9c] ss:$12 sps:$4 sm:$0xff]   ;;  %v4573_v24 = vld [vmem:[%s4684_s25 + $0xab4] ss:$12 sps:$4 sm:$0xff]  }
 0x12a   : > { %3019 = vmatprep.subr.bf16.mxu0 %v4497_v23  ;;  %v4570_v23 = vld [vmem:[%s4684_s25 + $0x920] ss:$12 sps:$4 sm:$0xff]  }
 0x12c   : > { %3981 = vmatpush3.bf16.msra.mxu1 %v4499_v26  ;;  %v4635_v26 = vmov 0  }
 0x12d   : > { %3020 = vmatpush1.bf16.msra.mxu0 %v4495_v25  ;;  %3982 = vmatprep.subr.bf16.mxu1 %v4503_v27  ;;  %v4574_v25 = vld [vmem:[%s4684_s25 + $0x9f8] ss:$12 sps:$4 sm:$0xff]  }
 0x12e   : > { %3021 = vmatprep.subr.bf16.mxu0 %v4502_v10  ;;  %v4575_v10 = vld [vmem:[%s4684_s25 + $0x938] ss:$12 sps:$4 sm:$0xff]  }
 0x12f   : > { %v4578_v27 = vld [vmem:[%s4684_s25 + $0xacc] ss:$12 sps:$4 sm:$0xff]  }
 0x130   : > { %3983 = vmatpush3.bf16.msra.mxu1 %v4504_v29  ;;  %v4576_v29 = vld [vmem:[%s4684_s25 + $0xac8] ss:$12 sps:$4 sm:$0xff]  }
 0x131   : > { %3022 = vmatpush1.bf16.msra.mxu0 %v4500_v28  ;;  %3984 = vmatprep.subr.bf16.mxu1 %v4508_v33  ;;  %v4579_v28 = vld [vmem:[%s4684_s25 + $0xa10] ss:$12 sps:$4 sm:$0xff]   ;;  %v4584_v33 = vld [vmem:[%s4684_s25 + $0xa28] ss:$12 sps:$4 sm:$0xff]  }
 0x132   : > { %3023 = vmatprep.subr.bf16.mxu0 %v4507_v30  ;;  %v4580_v30 = vld [vmem:[%s4684_s25 + $0x950] ss:$12 sps:$4 sm:$0xff]  }
 0x134   : > { %3985 = vmatpush3.bf16.msra.mxu1 %v4509_v35  ;;  %v4585_v35 = vld [vmem:[%s4684_s25 + $0x968] ss:$12 sps:$4 sm:$0xff]  }
 0x135   : > { %3024 = vmatpush1.bf16.msra.mxu0 %v4505_v34  ;;  %3986 = vmatprep.subr.bf16.mxu1 %v4513_v37  ;;  %v4581_v34 = vld [vmem:[%s4684_s25 + $0xae0] ss:$12 sps:$4 sm:$0xff]  }
 0x136   : > { %3025 = vmatprep.subr.bf16.mxu0 %v4512_v36  ;;  %v4588_v36 = vld [vmem:[%s4684_s25 + $0xafc] ss:$12 sps:$4 sm:$0xff]   ;;  %v4589_v37 = vld [vmem:[%s4684_s25 + $0xa40] ss:$12 sps:$4 sm:$0xff]  }
 0x138   : > { %3987 = vmatpush3.bf16.msra.mxu1 %v4514_v38  ;;  %v4590_v38 = vld [vmem:[%s4684_s25 + $0x980] ss:$12 sps:$4 sm:$0xff]  }
 0x139   : > { %3026 = vmatpush1.bf16.msra.mxu0 %v4510_v39  ;;  %3988 = vmatprep.subr.bf16.mxu1 %v4518_v42  ;;  %v4586_v39 = vld [vmem:[%s4684_s25 + $0xaf8] ss:$12 sps:$4 sm:$0xff]  }
 0x13a   : > { %3027 = vmatprep.subr.bf16.mxu0 %v4517_v41  ;;  %v4593_v41 = vld [vmem:[%s4684_s25 + $0xb14] ss:$12 sps:$4 sm:$0xff]   ;;  %v4594_v42 = vld [vmem:[%s4684_s25 + $0xa58] ss:$12 sps:$4 sm:$0xff]  }
 0x13c   : > { %3989 = vmatpush3.bf16.msra.mxu1 %v4519_v43  ;;  %v321_v43 = vcombine.high %v5023_v1, %v5023_v1  ;;  %v4596_v1 = vld [vmem:[%s4684_s25 + $0xb28] ss:$12 sps:$4 sm:$0xff]  }
 0x13d   : > { %3028 = vmatpush1.bf16.msra.mxu0 %v4515_v45  ;;  %3996 = vmatprep.subr.bf16.mxu1 %v4523_v47 }
 0x13e   : > { %3029 = vmatprep.subr.bf16.mxu0 %v4522_v44 }
 0x13f   : > { %3288 = vmatmul.mubr.bf16.vlgmr.msra.gmra.mrb[20].mxu1 %v4955_v3  ;;  %v4534_v3 = vld [vmem:[%s4684_s25 + $0x7b8] ss:$12 sps:$4 sm:$0xff]  }
 0x140   : > { %3997 = vmatpush3.bf16.msra.mxu1 %v4524_v49  ;;  %3327 = vmatprep.mubr.bf16.mxu1 %v4960_v7  ;;  %v4542_v7 = vld [vmem:[%s4684_s25 + $0xa24] ss:$12 sps:$4 sm:$0xff]  }
 0x141   : > { %3030 = vmatpush1.bf16.msra.mxu0 %v4520_v48  ;;  %3998 = vmatprep.subr.bf16.mxu1 %v4528_v50  ;;  %v4591_v48 = vld [vmem:[%s4684_s25 + $0xb10] ss:$12 sps:$4 sm:$0xff]   ;;  %v4595_v49 = vld [vmem:[%s4684_s25 + $0x998] ss:$12 sps:$4 sm:$0xff]  }
 0x142   : > { %3031 = vmatprep.subr.bf16.mxu0 %v4527_v40  ;;  %v4598_v50 = vld [vmem:[%s4684_s25 + $0xb2c] ss:$12 sps:$4 sm:$0xff]  }
 0x144   : > { %3999 = vmatpush3.bf16.msra.mxu1 %v4529_v52  ;;  %v335_v52 = vrot.slane %v321_v43, %v4736_v2 }
 0x145   : > { %3032 = vmatpush1.bf16.msra.mxu0 %v4525_v51  ;;  %4000 = vmatprep.subr.bf16.mxu1 %v4533_v55  ;;  %v4599_v51 = vld [vmem:[%s4684_s25 + $0xa70] ss:$12 sps:$4 sm:$0xff]  }
 0x146   : > { %3033 = vmatprep.subr.bf16.mxu0 %v4532_v46  ;;  %v4600_v46 = vld [vmem:[%s4684_s25 + $0x9b0] ss:$12 sps:$4 sm:$0xff]   ;;  %v366_v55 = vpack.c.bf16 %v335_v52, %v335_v52 }
 0x148   : > { %4001 = vmatpush3.bf16.msra.mxu1 %v4534_v3  ;;  %v4636_v3 = vmov 0.0  }
 0x149   : > { %3034 = vmatpush1.bf16.msra.mxu0 %v4530_v56  ;;  %4002 = vmatprep.subr.bf16.mxu1 %v4538_v31  ;;  %v4601_v56 = vld [vmem:[%s4684_s25 + $0xa88] ss:$12 sps:$4 sm:$0xff]   ;;  %v4603_v31 = vld [vmem:[%s4684_s25 + $0xab8] ss:$12 sps:$4 sm:$0xff]  }
 0x14a   : > { %3035 = vmatprep.subr.bf16.mxu0 %v4537_v57  ;;  %v4602_v57 = vld [vmem:[%s4684_s25 + $0xaa0] ss:$12 sps:$4 sm:$0xff]  }
 0x14c   : > { %4003 = vmatpush3.bf16.msra.mxu1 %v4539_v58  ;;  %v4605_v58 = vld [vmem:[%s4684_s25 + $0xae8] ss:$12 sps:$4 sm:$0xff]  }
 0x14d   : > { %3036 = vmatpush1.bf16.msra.mxu0 %v4535_v32  ;;  %4004 = vmatprep.subr.bf16.mxu1 %v4543_v60  ;;  %v4604_v32 = vld [vmem:[%s4684_s25 + $0xad0] ss:$12 sps:$4 sm:$0xff]  }
 0x14e   : > { %3037 = vmatprep.subr.bf16.mxu0 %v4542_v7  ;;  %v4606_v7 = vld [vmem:[%s4684_s25 + $0xb00] ss:$12 sps:$4 sm:$0xff]  }
 0x150   : > { %4005 = vmatpush3.bf16.msra.mxu1 %v4544_v62 }
 0x151   : > { %3038 = vmatpush1.bf16.msra.mxu0 %v4540_v61  ;;  %4006 = vmatprep.subr.bf16.mxu1 %v4548_v0  ;;  %v4607_v0 = vld [vmem:[%s4684_s25 + $0xb18] ss:$12 sps:$4 sm:$0xff]  }
 0x152   : > { %3039 = vmatprep.subr.bf16.mxu0 %v4547_v63 }
 0x154   : > { %4007 = vmatpush3.bf16.msra.mxu1 %v4549_v5  ;;  %v4608_v5 = vld [vmem:[%s4684_s25 + $0xb30] ss:$12 sps:$4 sm:$0xff]  }
 0x155   : > { %3040 = vmatpush1.bf16.msra.mxu0 %v4545_v4  ;;  %4008 = vmatprep.subr.bf16.mxu1 %v4553_v8 }
 0x156   : > { %3041 = vmatprep.subr.bf16.mxu0 %v4552_v6 }
 0x158   : > { %4009 = vmatpush3.bf16.msra.mxu1 %v4554_v11 }
 0x159   : > { %3042 = vmatpush1.bf16.msra.mxu0 %v4550_v9  ;;  %4010 = vmatprep.subr.bf16.mxu1 %v4558_v12 }
 0x15a   : > { %3043 = vmatprep.subr.bf16.mxu0 %v4557_v53 }
 0x15c   : > { %4011 = vmatpush3.bf16.msra.mxu1 %v4559_v16 }
 0x15d   : > { %3044 = vmatpush1.bf16.msra.mxu0 %v4555_v15  ;;  %4018 = vmatprep.subr.bf16.mxu1 %v4564_v20 }
 0x15e   : > { %3054 = vmatprep.subr.bf16.mxu0 %v4563_v17 }
 0x15f   : > { %3328 = vmatmul.mubr.bf16.vlgmr.msra.gmra.mrb[24].mxu1 %v5040_v13  ;;  %v4571_v13 = vld [vmem:[%s4684_s25 + $0xab0] ss:$12 sps:$4 sm:$0xff]  }
 0x160   : > { %3046 = vmatmul.mubr.bf16.vlgmr.msra.gmra.mrb[0].mxu0 %v5115_v59  ;;  %4019 = vmatpush3.bf16.msra.mxu1 %v4565_v21 }
 0x161   : > { %3055 = vmatpush1.bf16.msra.mxu0 %v4561_v19  ;;  %4020 = vmatprep.subr.bf16.mxu1 %v4569_v54 }
 0x162   : > { %3056 = vmatprep.subr.bf16.mxu0 %v4568_v22  ;;  %3086 = vmatprep.mubr.bf16.mxu0 %v4635_v26 }
 0x163   : > { %3367 = vmatprep.mubr.bf16.mxu1 %v5046_v18  ;;  %v4583_v18 = vld [vmem:[%s4684_s25 + $0xae4] ss:$12 sps:$4 sm:$0xff]  }
 0x164   : > { %4021 = vmatpush3.bf16.msra.mxu1 %v4570_v23 }
 0x165   : > { %3057 = vmatpush1.bf16.msra.mxu0 %v4566_v14  ;;  %4022 = vmatprep.subr.bf16.mxu1 %v4574_v25 }
 0x166   : > { %3058 = vmatprep.subr.bf16.mxu0 %v4573_v24 }
 0x168   : > { %4023 = vmatpush3.bf16.msra.mxu1 %v4575_v10 }
 0x169   : > { %3059 = vmatpush1.bf16.msra.mxu0 %v4571_v13  ;;  %4024 = vmatprep.subr.bf16.mxu1 %v4579_v28 }
 0x16a   : > { %3060 = vmatprep.subr.bf16.mxu0 %v4578_v27 }
 0x16c   : > { %4025 = vmatpush3.bf16.msra.mxu1 %v4580_v30 }
 0x16d   : > { %3061 = vmatpush1.bf16.msra.mxu0 %v4576_v29  ;;  %4026 = vmatprep.subr.bf16.mxu1 %v4584_v33 }
 0x16e   : > { %3062 = vmatprep.subr.bf16.mxu0 %v4583_v18 }
 0x170   : > { %4027 = vmatpush3.bf16.msra.mxu1 %v4585_v35 }
 0x171   : > { %3063 = vmatpush1.bf16.msra.mxu0 %v4581_v34  ;;  %4028 = vmatprep.subr.bf16.mxu1 %v4589_v37 }
 0x172   : > { %3064 = vmatprep.subr.bf16.mxu0 %v4588_v36  ;;  %v5144_v45 = vpop.f32.mrb[0].mxu1 }
 0x173   : > { %v5148_v44 = vpop.f32.mrb[1].mxu1 }
 0x174   : > { %v2846_v47 = vpop.f32.mrb[2].mxu1  ;;  %4029 = vmatpush3.bf16.msra.mxu1 %v4590_v38 }
 0x175   : > { %3065 = vmatpush1.bf16.msra.mxu0 %v4586_v39  ;;  %v2847_v40 = vpop.f32.mrb[3].mxu1  ;;  %4030 = vmatprep.subr.bf16.mxu1 %v4594_v42 }
 0x176   : > { %3066 = vmatprep.subr.bf16.mxu0 %v4593_v41 }
 0x178   : > { %4031 = vmatpush3.bf16.msra.mxu1 %v4595_v49 }
 0x179   : > { %3067 = vmatpush1.bf16.msra.mxu0 %v4591_v48  ;;  %4032 = vmatprep.subr.bf16.mxu1 %v4599_v51 }
 0x17a   : > { %3068 = vmatprep.subr.bf16.mxu0 %v4598_v50 }
 0x17c   : > { %4033 = vmatpush3.bf16.msra.mxu1 %v4600_v46 }
 0x17d   : > { %3069 = vmatpush1.bf16.msra.mxu0 %v4596_v1  ;;  %4049 = vmatprep.subr.bf16.mxu1 %v4636_v3 }
 0x17f   : > { %3368 = vmatmul.mubr.bf16.vlgmr.msra.gmra.mrb[28].mxu1 %v5115_v59 }
 0x180   : > { %3087 = vmatmul.mubr.bf16.vlgmr.msra.gmra.mrb[0].mxu0 %v366_v55  ;;  %4050 = vmatpush3.bf16.msra.mxu1 %v4601_v56 }
 0x181   : > { %4065 = vmatprep.mubr.msk.bf16.mxu1 %vm4637_vm0, %v4636_v3  ;;  %4051 = vmatprep.subr.bf16.mxu1 %v4636_v3 }
 0x184   : > { %4052 = vmatpush3.bf16.msra.mxu1 %v4602_v57 }
 0x185   : > { %4053 = vmatprep.subr.bf16.mxu1 %v4636_v3 }
 0x188   : > { %4054 = vmatpush3.bf16.msra.mxu1 %v4603_v31 }
 0x189   : > { %4055 = vmatprep.subr.bf16.mxu1 %v4636_v3 }
 0x18c   : > { %4056 = vmatpush3.bf16.msra.mxu1 %v4604_v32 }
 0x18d   : > { %4057 = vmatprep.subr.bf16.mxu1 %v4636_v3 }
 0x190   : > { %4058 = vmatpush3.bf16.msra.mxu1 %v4605_v58 }
 0x191   : > { %4059 = vmatprep.subr.bf16.mxu1 %v4636_v3 }
 0x192   : > { %v3902_v60 = vpop.f32.mrb[4].mxu1 }
 0x193   : > { %v3903_v61 = vpop.f32.mrb[5].mxu1 }
 0x194   : > { %v3904_v62 = vadd.f32 %v3903_v61, %v3902_v60  ;;  %v3905_v63 = vpop.f32.mrb[6].mxu1  ;;  %4060 = vmatpush3.bf16.msra.mxu1 %v4606_v7 }
 0x195   : > { %v3906_v4 = vpop.f32.mrb[7].mxu1  ;;  %4061 = vmatprep.subr.bf16.mxu1 %v4636_v3 }
 0x198   : > { %4062 = vmatpush3.bf16.msra.mxu1 %v4607_v0 }
 0x199   : > { %4063 = vmatprep.subr.bf16.mxu1 %v4636_v3 }
 0x19c   : > { %4064 = vmatpush3.bf16.msra.mxu1 %v4608_v5 }
 0x19f   : > { %4066 = vmatmul.mubr.bf16.vlgmr.msra.gmra.mrb[32].mxu1 %v366_v55 }
 0x1b2   : > { %v3924_v6 = vpop.f32.mrb[8].mxu1 }
 0x1b3   : > { %v3925_v8 = vpop.f32.mrb[9].mxu1 }
 0x1b4   : > { %v3926_v9 = vadd.f32 %v3925_v8, %v3924_v6  ;;  %v3927_v11 = vpop.f32.mrb[10].mxu1 }
 0x1b5   : > { %v3928_v53 = vpop.f32.mrb[11].mxu1 }
 0x1b6   : > { %v3170_v12 = vadd.f32 %v3926_v9, %v3904_v62 }
 0x1d2   : > { %v3946_v15 = vpop.f32.mrb[12].mxu1 }
 0x1d3   : > { %v3947_v16 = vpop.f32.mrb[13].mxu1 }
 0x1d4   : > { %v3948_v17 = vadd.f32 %v3947_v16, %v3946_v15  ;;  %v3949_v20 = vpop.f32.mrb[14].mxu1 }
 0x1d5   : > { %v3950_v59 = vpop.f32.mrb[15].mxu1 }
 0x1d6   : > { %v3210_v19 = vadd.f32 %v3948_v17, %v3170_v12 }
 0x1f2   : > { %v3968_v21 = vpop.f32.mrb[16].mxu1 }
 0x1f3   : > { %v3969_v22 = vpop.f32.mrb[17].mxu1 }
 0x1f4   : > { %v3970_v54 = vadd.f32 %v3969_v22, %v3968_v21  ;;  %v3971_v14 = vpop.f32.mrb[18].mxu1 }
 0x1f5   : > { %v3972_v23 = vpop.f32.mrb[19].mxu1 }
 0x1f6   : > { %v3250_v24 = vadd.f32 %v3970_v54, %v3210_v19 }
 0x212   : > { %v3990_v25 = vpop.f32.mrb[20].mxu1 }
 0x213   : > { %v3991_v26 = vpop.f32.mrb[21].mxu1 }
 0x214   : > { %v3992_v13 = vadd.f32 %v3991_v26, %v3990_v25  ;;  %v3993_v10 = vpop.f32.mrb[22].mxu1 }
 0x215   : > { %v3994_v27 = vpop.f32.mrb[23].mxu1 }
 0x216   : > { %v3290_v28 = vadd.f32 %v3992_v13, %v3250_v24 }
 0x232   : > { %v4012_v29 = vpop.f32.mrb[24].mxu1 }
 0x233   : > { %v4013_v30 = vpop.f32.mrb[25].mxu1 }
 0x234   : > { %v4014_v18 = vadd.f32 %v4013_v30, %v4012_v29  ;;  %v4015_v33 = vpop.f32.mrb[26].mxu1 }
 0x235   : > { %v4016_v34 = vpop.f32.mrb[27].mxu1 }
 0x236   : > { %v3330_v35 = vadd.f32 %v4014_v18, %v3290_v28 }
 0x252   : > { %v4034_v37 = vpop.f32.mrb[28].mxu1 }
 0x253   : > { %v3088_v36 = vpop.f32.mrb[0].mxu0  ;;  %v4035_v41 = vpop.f32.mrb[29].mxu1 }
 0x254   : > { %v4069_v39 = vadd.f32 %v3088_v36, %v5144_v45  ;;  %v3090_v38 = vpop.f32.mrb[1].mxu0  ;;  %v4036_v43 = vadd.f32 %v4035_v41, %v4034_v37  ;;  %v4037_v48 = vpop.f32.mrb[30].mxu1 }
 0x255   : > { %v4070_v42 = vadd.f32 %v3090_v38, %v5148_v44  ;;  %v3092_v47 = vpop.f32.mrb[2].mxu0  ;;  %v4038_v40 = vpop.f32.mrb[31].mxu1  ;;  %v261_v44 = vld [vmem:[%s5188_s3] sm:$0x3f] }
 0x256   : > { %v3093_v49 = vpop.f32.mrb[3].mxu0  ;;  %v3370_v51 = vadd.f32 %v4036_v43, %v3330_v35 }
 0x257   : > { %v3418_v50 = vcombine.low %v4069_v39, %v4070_v42 }
 0x259   : > { %v3425_v56 = vrot.slane %v3418_v50, %v4736_v2 }
 0x272   : > { %v3409_v52 = vpop.f32.mrb[32].mxu1 }
 0x273   : > { %v3410_v1 = vadd.f32 %v3409_v52, %v3370_v51  ;;  %v4067_v46 = vpop.f32.mrb[33].mxu1 }
 0x274   : > { %v3412_v55 = vpop.f32.mrb[34].mxu1 }
 0x275   : > { %v3432_v3 = vrot.slane %v3410_v1, %v4736_v2  ;;  %v4068_v45 = vpop.f32.mrb[35].mxu1 }
 0x277   : > { %v3433_v57 = vcombine.low %v3425_v56, %v3432_v3 }
 0x279   : > { %v3435_v31 = vadd.f32 %v3433_v57, %v261_v44 }
 0x27b   : > { %3436 = vst [vmem:[%s5188_s3] sm:$0x3f] %v3435_v31 }
 0x27c PF: > { %s13_s14 = sadd.s32 1, %s4631_s14   ;;  %s5189_s12 = smov %s4627_s13 }
 0x27d   : > { %p10_p7 = scmp.ge.s32.totalorder %s13_s14, 4   ;;  %s5190_s13 = smov %s5192_s15 }
 0x27f   :  { %12 = sbr.rel (!%p10_p7) target bundleno = 2 (0x2), region = 69 }

</bundles_post_ra>
